<compile_context>
chip_gen: v6e
topology: v6e:2x2x1
jax: 0.10.0
libtpu: 0.0.40
codegen_flags: <defaults>
</compile_context>

<pallas_src>
import functools

import jax
import jax.numpy as jnp
from jax import lax
from jax.experimental import pallas as pl
from jax.experimental.pallas import tpu as pltpu


def _round_up(x, m):
    return (x + m - 1) // m * m


# --------------------------------------------------------------------------
# Kernel
# --------------------------------------------------------------------------
def _sage_layer_kernel(cnt_ref, kidx_ref, adj_ref, xs_ref, xt_ref, invd_ref,
                       w_ref, b_ref, out_ref, acc_ref, *,
                       f_in_pad, tk, num_kk, f_out_valid, xs_resident,
                       apply_relu, apply_log_softmax):
    i = pl.program_id(0)
    kk = pl.program_id(1)

    @pl.when(kk == 0)
    def _init():
        acc_ref[:, :f_in_pad] = jnp.zeros(
            (acc_ref.shape[0], f_in_pad), jnp.float32)
        # Keep x_tgt adjacent to the aggregation so lin_l/lin_r fuse into a
        # single matmul against W = [W_l ; W_r] (no in-kernel concat/copy).
        acc_ref[:, f_in_pad:] = xt_ref[...].astype(jnp.float32)

    # One NONZERO (tm, tk) adjacency block: int8 counts -> bf16 on the VPU,
    # MXU matmul with f32 accumulation.  Steps with kk >= cnt are padding
    # steps whose DMA was already skipped by the index_map (repeated index).
    @pl.when(kk < cnt_ref[i])
    def _aggregate():
        if xs_resident:
            kblk = kidx_ref[i * num_kk + kk]
            start = pl.multiple_of(kblk * tk, 128)
            xs = xs_ref[pl.ds(start, tk), :]
        else:
            xs = xs_ref[...]
        adj = adj_ref[...].astype(jnp.bfloat16)
        acc_ref[:, :f_in_pad] += jnp.dot(adj, xs,
                                         preferred_element_type=jnp.float32)

    @pl.when(kk == num_kk - 1)
    def _epilogue():
        # Mean aggregation: per-row 1/deg rescale in f32 before the W matmul.
        acc_ref[:, :f_in_pad] = acc_ref[:, :f_in_pad] * invd_ref[...]
        z = acc_ref[...].astype(w_ref.dtype)             # (tm, 2*f_in_pad) bf16
        h = jnp.dot(z, w_ref[...], preferred_element_type=jnp.float32)
        h = h + b_ref[...]                                # f32 epilogue
        if apply_relu:
            h = jnp.maximum(h, 0.0)
            # TODO(synk): training-mode dropout(p=0.5) would use
            # pltpu.prng_seed / pltpu.prng_random_bits; eval => identity.
        if apply_log_softmax:
            col = lax.broadcasted_iota(jnp.int32, h.shape, 1)
            valid = col < f_out_valid                     # mask padded lanes
            m = jnp.max(jnp.where(valid, h, -jnp.inf), axis=-1, keepdims=True)
            e = jnp.where(valid, jnp.exp(h - m), 0.0)
            lse = jnp.log(jnp.sum(e, axis=-1, keepdims=True))
            h = h - m - lse
        out_ref[...] = h.astype(out_ref.dtype)


# --------------------------------------------------------------------------
# Per-layer wrapper
# --------------------------------------------------------------------------
def sage_layer(edge_index, x, n_src, n_tgt, w_fused, b, *, f_out, relu,
               log_softmax, tm_max=256, tk_max=1024,
               xs_resident_bytes=12 << 20):
    src, dst = edge_index
    f_in_pad = w_fused.shape[0] // 2
    f_out_pad = w_fused.shape[1]

    # --- tile sizes (tm multiple of 32 for the int8 adjacency layout) ---
    if n_tgt <= tm_max:
        tm = _round_up(n_tgt, 32)
    elif n_tgt < 2 * tm_max:
        tm = _round_up(-(-n_tgt // 2), 32)   # >= 2 i-tiles -> v7x megacore
    else:
        tm = tm_max
    tk = tk_max if n_src >= tk_max else _round_up(n_src, 128)
    n_tgt_pad = _round_up(n_tgt, tm)
    n_src_pad = _round_up(n_src, tk)
    num_i = n_tgt_pad // tm
    num_k = n_src_pad // tk

    # --- O(E) metadata: degrees + per-row-tile nonzero k-block lists ---
    deg = jnp.zeros((n_tgt_pad,), jnp.float32).at[dst].add(1.0)
    inv_deg = (1.0 / jnp.maximum(deg, 1.0)).reshape(n_tgt_pad, 1)

    blk = jnp.zeros((num_i, num_k), jnp.int32).at[dst // tm, src // tk].add(1)
    occ = blk > 0
    counts = occ.sum(axis=1).astype(jnp.int32)            # (num_i,)
    # Grid extent along the reduction = max nonzero adjacency blocks in any
    # row tile (host value; in production precompute from the host edge list).
    num_kk = max(int(jnp.max(counts)), 1)
    order = jnp.argsort((~occ).astype(jnp.int32), axis=1).astype(jnp.int32)
    kidx = order[:, :num_kk]                               # nonzero blocks first
    last_valid = jnp.take_along_axis(
        kidx, jnp.maximum(counts - 1, 0)[:, None], axis=1)
    kk_iota = jnp.arange(num_kk, dtype=jnp.int32)[None, :]
    kidx = jnp.where(kk_iota < counts[:, None], kidx, last_valid)  # repeat=>skip DMA
    kidx_flat = kidx.reshape(-1).astype(jnp.int32)

    # --- adjacency: raw int8 edge counts, built directly in final dtype ---
    adj_i8 = jnp.zeros((n_tgt_pad, n_src_pad), jnp.int8).at[dst, src].add(
        jnp.ones_like(src, jnp.int8))
    # TODO(synk): >127 duplicate edges per (dst, src) pair would overflow int8.

    # --- features: pad rows / lanes once, bf16 (hidden layers arrive padded) ---
    rows_needed = max(n_src_pad, n_tgt_pad)
    x_bf = x.astype(jnp.bfloat16)
    if x_bf.shape[0] > rows_needed:
        x_bf = x_bf[:rows_needed]
    pad_r = rows_needed - x_bf.shape[0]
    pad_f = f_in_pad - x_bf.shape[1]
    if pad_r or pad_f:
        x_bf = jnp.pad(x_bf, ((0, pad_r), (0, pad_f)))
    x_src_p = x_bf[:n_src_pad]
    x_tgt_p = x_bf[:n_tgt_pad]

    xs_bytes = n_src_pad * f_in_pad * 2
    xs_resident = 2 * xs_bytes <= xs_resident_bytes        # incl. double buffer

    out_dtype = jnp.float32 if log_softmax else jnp.bfloat16
    out_isize = 4 if log_softmax else 2

    kernel = functools.partial(
        _sage_layer_kernel, f_in_pad=f_in_pad, tk=tk, num_kk=num_kk,
        f_out_valid=f_out, xs_resident=xs_resident,
        apply_relu=relu, apply_log_softmax=log_softmax)

    if xs_resident:
        xs_spec = pl.BlockSpec((n_src_pad, f_in_pad),
                               lambda i, kk, cnt, kidx: (0, 0))
    else:
        xs_spec = pl.BlockSpec(
            (tk, f_in_pad),
            lambda i, kk, cnt, kidx: (kidx[i * num_kk + kk], 0))

    # --- cost / VMEM bookkeeping ---
    nnz_blocks = int(jnp.sum(counts))
    flops = (2 * nnz_blocks * tm * tk * f_in_pad
             + 2 * n_tgt_pad * (2 * f_in_pad) * f_out_pad)
    transcendentals = n_tgt_pad * f_out_pad if log_softmax else 0
    bytes_accessed = (nnz_blocks * tm * tk                               # int8 adj
                      + (xs_bytes if xs_resident
                         else nnz_blocks * tk * f_in_pad * 2)
                      + n_tgt_pad * f_in_pad * 2 + n_tgt_pad * 4
                      + w_fused.size * 2 + b.size * 4
                      + n_tgt_pad * f_out_pad * out_isize)

    vmem = 2 * tm * tk                                       # adj (int8) x 2 bufs
    vmem += 2 * xs_bytes if xs_resident else 2 * tk * f_in_pad * 2
    vmem += 2 * (tm * f_in_pad * 2 + tm * 4)                 # x_tgt + inv_deg
    vmem += 2 * (2 * f_in_pad * f_out_pad * 2 + f_out_pad * 4)
    vmem += 2 * tm * f_out_pad * out_isize
    vmem += tm * 2 * f_in_pad * 4                            # f32 accumulator
    try:
        phys_vmem = int(pltpu.get_tpu_info().vmem_capacity_bytes)
    except Exception:
        phys_vmem = 64 << 20                                 # v7x lower bound
    cap = (phys_vmem * 3) // 4                               # compiler headroom
    vmem_limit = int(min(max(vmem + (8 << 20), 32 << 20), cap))

    out_pad = pl.pallas_call(
        kernel,
        out_shape=jax.ShapeDtypeStruct((n_tgt_pad, f_out_pad), out_dtype),
        grid_spec=pltpu.PrefetchScalarGridSpec(
            num_scalar_prefetch=2,
            grid=(num_i, num_kk),
            in_specs=[
                pl.BlockSpec((tm, tk),
                             lambda i, kk, cnt, kidx:
                             (i, kidx[i * num_kk + kk])),
                xs_spec,
                pl.BlockSpec((tm, f_in_pad), lambda i, kk, cnt, kidx: (i, 0)),
                pl.BlockSpec((tm, 1), lambda i, kk, cnt, kidx: (i, 0)),
                pl.BlockSpec((2 * f_in_pad, f_out_pad),
                             lambda i, kk, cnt, kidx: (0, 0)),
                pl.BlockSpec((1, f_out_pad), lambda i, kk, cnt, kidx: (0, 0)),
            ],
            out_specs=pl.BlockSpec((tm, f_out_pad),
                                   lambda i, kk, cnt, kidx: (i, 0)),
            scratch_shapes=[pltpu.VMEM((tm, 2 * f_in_pad), jnp.float32)],
        ),
        compiler_params=pltpu.CompilerParams(
            dimension_semantics=("parallel", "arbitrary"),
            vmem_limit_bytes=vmem_limit),
        cost_estimate=pl.CostEstimate(
            flops=flops, transcendentals=transcendentals,
            bytes_accessed=bytes_accessed),
        # TODO(synk): sweep pipeline_mode=pl.Buffered(3) on the adjacency spec
        # once the block-skip makes fetches bursty (few-% win when mem-bound).
    )(counts, kidx_flat, adj_i8, x_src_p, x_tgt_p, inv_deg, w_fused, b)

    return out_pad   # padded (n_tgt_pad, f_out_pad); sliced only after last layer


# --------------------------------------------------------------------------
# Plain-JAX glue: params, forward
# --------------------------------------------------------------------------
def init_sage_params(key, in_channels, hidden_channels, out_channels, num_layers):
    """Deterministic parameter init. Weights stored transposed: [f_in, f_out]."""
    dims = [in_channels] + [hidden_channels] * (num_layers - 1) + [out_channels]
    params = []
    for i in range(num_layers):
        f_in, f_out = dims[i], dims[i + 1]
        key, k1, k2, k3 = jax.random.split(key, 4)
        scale = 1.0 / jnp.sqrt(jnp.float32(f_in))
        wl = jax.random.normal(k1, (f_in, f_out), jnp.float32) * scale  # lin_l.T
        wr = jax.random.normal(k2, (f_in, f_out), jnp.float32) * scale  # lin_r.T
        b = jax.random.normal(k3, (f_out,), jnp.float32) * 0.01         # lin_l.bias
        params.append((wl, wr, b))
    return params


def prepare_fused_params(params):
    """Pad features to 128 multiples and fuse W = [W_l ; W_r] (bf16), bias f32."""
    fused = []
    for wl, wr, b in params:
        f_in, f_out = wl.shape
        f_in_pad = _round_up(f_in, 128)
        f_out_pad = _round_up(f_out, 128)
        w = jnp.zeros((2 * f_in_pad, f_out_pad), jnp.float32)
        w = w.at[:f_in, :f_out].set(wl)
        w = w.at[f_in_pad:f_in_pad + f_in, :f_out].set(wr)
        b_p = jnp.zeros((1, f_out_pad), jnp.float32).at[0, :f_out].set(b)
        fused.append((w.astype(jnp.bfloat16), b_p, f_out))
    return fused


def sage_forward(x, adjs, fused_params):
    """Mirrors SAGE.forward: adjs[i] = ((src, dst), (n_src, n_tgt))."""
    num_layers = len(fused_params)
    for i, (edge_index, size) in enumerate(adjs):
        n_src, n_tgt = size
        w, bparam, f_out = fused_params[i]
        last = (i == num_layers - 1)
        x = sage_layer(edge_index, x, n_src, n_tgt, w, bparam, f_out=f_out,
                       relu=not last, log_softmax=last)
        # F.dropout(p=0.5, training=False) -> identity (eval semantics).
        if last:
            x = x[:n_tgt, :f_out]
    return x


def _reference_forward(x, adjs, params):
    """Pure-JAX reference mirroring the kernel's bf16-matmul / f32-rescale math."""
    num_layers = len(params)
    h = x
    for i, ((src, dst), size) in enumerate(adjs):
        n_src, n_tgt = size
        wl, wr, bb = params[i]
        cnts = jnp.zeros((n_tgt, n_src), jnp.float32).at[dst, src].add(1.0)
        deg = jnp.sum(cnts, axis=1, keepdims=True)
        h_src = h[:n_src].astype(jnp.bfloat16)
        h_tgt = h[:n_tgt].astype(jnp.bfloat16)
        agg = jnp.dot(cnts.astype(jnp.bfloat16), h_src,
                      preferred_element_type=jnp.float32)
        agg = agg / jnp.maximum(deg, 1.0)
        out = (jnp.dot(agg.astype(jnp.bfloat16), wl.astype(jnp.bfloat16),
                       preferred_element_type=jnp.float32)
               + jnp.dot(h_tgt, wr.astype(jnp.bfloat16),
                         preferred_element_type=jnp.float32)
               + bb[None, :])
        if i != num_layers - 1:
            out = jnp.maximum(out, 0.0)
        else:
            out = jax.nn.log_softmax(out, axis=-1)
        h = out
    return h


# --------------------------------------------------------------------------
# Demo
# --------------------------------------------------------------------------
if __name__ == "__main__":
    key = jax.random.PRNGKey(0)

    in_channels, hidden_channels, out_channels = 96, 64, 48
    num_layers = 3
    # Neighbor-sampled node counts per hop: layer i aggregates n_nodes[i]
    # source nodes into n_nodes[i+1] targets (targets = first size[1] rows).
    n_nodes = [320, 160, 80, 40]
    num_edges = [1600, 800, 400]

    key, kx = jax.random.split(key)
    x = jax.random.normal(kx, (n_nodes[0], in_channels), jnp.float32)

    adjs = []
    for i in range(num_layers):
        n_src, n_tgt = n_nodes[i], n_nodes[i + 1]
        key, ks, kd = jax.random.split(key, 3)
        src = jax.random.randint(ks, (num_edges[i],), 0, n_src)
        dst = jax.random.randint(kd, (num_edges[i],), 0, n_tgt)
        adjs.append(((src, dst), (n_src, n_tgt)))

    params = init_sage_params(key, in_channels, hidden_channels, out_channels,
                              num_layers)
    fused_params = prepare_fused_params(params)

    out = sage_forward(x, adjs, fused_params)
    out = jax.block_until_ready(out)
    assert out.shape == (n_nodes[-1], out_channels), out.shape

    # log_softmax rows (over the real out_channels) must exp-sum to ~1.
    assert jnp.allclose(jnp.sum(jnp.exp(out), axis=-1), 1.0, atol=1e-3)

    # Cross-check against the plain-JAX reference (same bf16/f32 numerics,
    # tolerance rather than bit-parity with f32 PyTorch/PyG).
    ref = jax.block_until_ready(_reference_forward(x, adjs, params))
    assert jnp.allclose(out, ref, atol=2e-2), float(jnp.max(jnp.abs(out - ref)))

    print("KERNEL_OK")
</pallas_src>

<mosaic_0001>
module attributes {stable_mosaic.version = 11 : i64} {
  func.func @_sage_layer_kernel(%arg0: i32, %arg1: i32, %arg2: memref<1xi32, #tpu.memory_space<smem>>, %arg3: memref<1xi32, #tpu.memory_space<smem>>, %arg4: memref<160x384xi8, #tpu.memory_space<vmem>>, %arg5: memref<384x128xbf16, #tpu.memory_space<vmem>>, %arg6: memref<160x128xbf16, #tpu.memory_space<vmem>>, %arg7: memref<160x1xf32, #tpu.memory_space<vmem>>, %arg8: memref<256x128xbf16, #tpu.memory_space<vmem>>, %arg9: memref<1x128xf32, #tpu.memory_space<vmem>>, %arg10: memref<160x128xbf16, #tpu.memory_space<vmem>>, %arg11: memref<160x256xf32, #tpu.memory_space<vmem>>) attributes {dimension_semantics = [#tpu.dimension_semantics<parallel>, #tpu.dimension_semantics<arbitrary>], iteration_bounds = array<i64: 1, 1>, scalar_prefetch = 2 : i64, scratch_operands = 1 : i64, tpu.core_type = #tpu.core_type<tc>, window_params = [{transform_indices = @transform_0, window_bounds = array<i64: 160, 384>}, {pipeline_mode = #tpu.pipeline_mode<synchronous>, transform_indices = @transform_1, window_bounds = array<i64: 384, 128>}, {transform_indices = @transform_2, window_bounds = array<i64: 160, 128>}, {transform_indices = @transform_3, window_bounds = array<i64: 160, 1>}, {pipeline_mode = #tpu.pipeline_mode<synchronous>, transform_indices = @transform_4, window_bounds = array<i64: 256, 128>}, {pipeline_mode = #tpu.pipeline_mode<synchronous>, transform_indices = @transform_5, window_bounds = array<i64: 1, 128>}, {transform_indices = @transform_6, window_bounds = array<i64: 160, 128>}]} {
    %c0_i32 = arith.constant 0 : i32
    %0 = arith.cmpi eq, %arg1, %c0_i32 : i32
    %1 = arith.extui %0 : i1 to i32
    %c0_i32_0 = arith.constant 0 : i32
    %2 = arith.cmpi ne, %1, %c0_i32_0 : i32
    scf.if %2 {
      %cst = arith.constant 0.000000e+00 : f32
      %11 = vector.broadcast %cst : f32 to vector<160x128xf32>
      %c0 = arith.constant 0 : index
      %c0_4 = arith.constant 0 : index
      %12 = vector.load %arg11[%c0, %c0_4] : memref<160x256xf32, #tpu.memory_space<vmem>>, vector<160x128xf32>
      tpu.vector_store %arg11[%c0, %c0_4], %11 {strides = array<i32>} : memref<160x256xf32, #tpu.memory_space<vmem>>, vector<160x128xf32>,
      %c0_5 = arith.constant 0 : index
      %c0_6 = arith.constant 0 : index
      %13 = vector.load %arg6[%c0_5, %c0_6] : memref<160x128xbf16, #tpu.memory_space<vmem>>, vector<160x128xbf16>
      %14 = arith.extf %13 : vector<160x128xbf16> to vector<160x128xf32>
      %c0_7 = arith.constant 0 : index
      %c128 = arith.constant 128 : index
      %15 = vector.load %arg11[%c0_7, %c128] : memref<160x256xf32, #tpu.memory_space<vmem>>, vector<160x128xf32>
      tpu.vector_store %arg11[%c0_7, %c128], %14 {strides = array<i32>} : memref<160x256xf32, #tpu.memory_space<vmem>>, vector<160x128xf32>,
    } else {
    }
    %3 = arith.index_cast %arg0 : i32 to index
    %4 = memref.load %arg2[%3] : memref<1xi32, #tpu.memory_space<smem>>
    %5 = arith.cmpi slt, %arg1, %4 : i32
    %6 = arith.extui %5 : i1 to i32
    %c0_i32_1 = arith.constant 0 : i32
    %7 = arith.cmpi ne, %6, %c0_i32_1 : i32
    scf.if %7 {
      %c1_i32 = arith.constant 1 : i32
      %11 = arith.muli %arg0, %c1_i32 : i32
      %12 = arith.addi %11, %arg1 : i32
      %13 = arith.index_cast %12 : i32 to index
      %14 = memref.load %arg3[%13] : memref<1xi32, #tpu.memory_space<smem>>
      %c384_i32 = arith.constant 384 : i32
      %15 = arith.muli %14, %c384_i32 : i32
      %16 = tpu.assume_multiple %15, 128 : i32
      %17 = arith.index_cast %16 : i32 to index
      %c0 = arith.constant 0 : index
      %18 = vector.load %arg5[%17, %c0] : memref<384x128xbf16, #tpu.memory_space<vmem>>, vector<384x128xbf16>
      %c0_4 = arith.constant 0 : index
      %c0_5 = arith.constant 0 : index
      %19 = vector.load %arg4[%c0_4, %c0_5] : memref<160x384xi8, #tpu.memory_space<vmem>>, vector<160x384xi8>
      %20 = arith.sitofp %19 : vector<160x384xi8> to vector<160x384xbf16>
      %c0_6 = arith.constant 0 : index
      %c0_7 = arith.constant 0 : index
      %21 = vector.load %arg11[%c0_6, %c0_7] : memref<160x256xf32, #tpu.memory_space<vmem>>, vector<160x128xf32>
      %cst = arith.constant dense<0.000000e+00> : vector<160x128xf32>
      %22 = tpu.matmul %20, %18, %cst {dimension_numbers = #tpu.dot_dimension_numbers<[1], [0], [0], [1], [0, 0, 1, 1], [], []>} : vector<160x384xbf16>, vector<384x128xbf16>, vector<160x128xf32> -> vector<160x128xf32>
      %23 = arith.addf %21, %22 : vector<160x128xf32>
      %c0_8 = arith.constant 0 : index
      %c0_9 = arith.constant 0 : index
      %24 = vector.load %arg11[%c0_8, %c0_9] : memref<160x256xf32, #tpu.memory_space<vmem>>, vector<160x128xf32>
      tpu.vector_store %arg11[%c0_8, %c0_9], %23 {strides = array<i32>} : memref<160x256xf32, #tpu.memory_space<vmem>>, vector<160x128xf32>,
    } else {
    }
    %c0_i32_2 = arith.constant 0 : i32
    %8 = arith.cmpi eq, %arg1, %c0_i32_2 : i32
    %9 = arith.extui %8 : i1 to i32
    %c0_i32_3 = arith.constant 0 : i32
    %10 = arith.cmpi ne, %9, %c0_i32_3 : i32
    scf.if %10 {
      %c0 = arith.constant 0 : index
      %c0_4 = arith.constant 0 : index
      %11 = vector.load %arg11[%c0, %c0_4] : memref<160x256xf32, #tpu.memory_space<vmem>>, vector<160x128xf32>
      %c0_5 = arith.constant 0 : index
      %c0_6 = arith.constant 0 : index
      %12 = vector.load %arg7[%c0_5, %c0_6] : memref<160x1xf32, #tpu.memory_space<vmem>>, vector<160x1xf32>
      %13 = vector.broadcast %12 : vector<160x1xf32> to vector<160x128xf32>
      %14 = arith.mulf %11, %13 : vector<160x128xf32>
      %c0_7 = arith.constant 0 : index
      %c0_8 = arith.constant 0 : index
      %15 = vector.load %arg11[%c0_7, %c0_8] : memref<160x256xf32, #tpu.memory_space<vmem>>, vector<160x128xf32>
      tpu.vector_store %arg11[%c0_7, %c0_8], %14 {strides = array<i32>} : memref<160x256xf32, #tpu.memory_space<vmem>>, vector<160x128xf32>,
      %c0_9 = arith.constant 0 : index
      %c0_10 = arith.constant 0 : index
      %16 = vector.load %arg11[%c0_9, %c0_10] : memref<160x256xf32, #tpu.memory_space<vmem>>, vector<160x256xf32>
      %17 = arith.truncf %16 : vector<160x256xf32> to vector<160x256xbf16>
      %c0_11 = arith.constant 0 : index
      %c0_12 = arith.constant 0 : index
      %18 = vector.load %arg8[%c0_11, %c0_12] : memref<256x128xbf16, #tpu.memory_space<vmem>>, vector<256x128xbf16>
      %cst = arith.constant dense<0.000000e+00> : vector<160x128xf32>
      %19 = tpu.matmul %17, %18, %cst {dimension_numbers = #tpu.dot_dimension_numbers<[1], [0], [0], [1], [0, 0, 1, 1], [], []>} : vector<160x256xbf16>, vector<256x128xbf16>, vector<160x128xf32> -> vector<160x128xf32>
      %c0_13 = arith.constant 0 : index
      %c0_14 = arith.constant 0 : index
      %20 = vector.load %arg9[%c0_13, %c0_14] : memref<1x128xf32, #tpu.memory_space<vmem>>, vector<1x128xf32>
      %21 = vector.broadcast %20 : vector<1x128xf32> to vector<160x128xf32>
      %22 = arith.addf %19, %21 : vector<160x128xf32>
      %cst_15 = arith.constant 0.000000e+00 : f32
      %23 = vector.broadcast %cst_15 : f32 to vector<160x128xf32>
      %24 = arith.maximumf %22, %23 : vector<160x128xf32>
      %25 = arith.truncf %24 : vector<160x128xf32> to vector<160x128xbf16>
      %c0_16 = arith.constant 0 : index
      %c0_17 = arith.constant 0 : index
      %26 = vector.load %arg10[%c0_16, %c0_17] : memref<160x128xbf16, #tpu.memory_space<vmem>>, vector<160x128xbf16>
      tpu.vector_store %arg10[%c0_16, %c0_17], %25 {strides = array<i32>} : memref<160x128xbf16, #tpu.memory_space<vmem>>, vector<160x128xbf16>,
    } else {
    }
    return
  }
  func.func @transform_0(%arg0: i32, %arg1: i32, %arg2: memref<1xi32, #tpu.memory_space<smem>>, %arg3: memref<1xi32, #tpu.memory_space<smem>>) -> (i32, i32) {
    %c1_i32 = arith.constant 1 : i32
    %0 = arith.muli %arg0, %c1_i32 : i32
    %1 = arith.addi %0, %arg1 : i32
    %2 = arith.index_cast %1 : i32 to index
    %3 = memref.load %arg3[%2] : memref<1xi32, #tpu.memory_space<smem>>
    %c0_i32 = arith.constant 0 : i32
    return %arg0, %3 : i32, i32
  }
  func.func @transform_1(%arg0: i32, %arg1: i32, %arg2: memref<1xi32, #tpu.memory_space<smem>>, %arg3: memref<1xi32, #tpu.memory_space<smem>>) -> (i32, i32) {
    %c0_i32 = arith.constant 0 : i32
    %c0_i32_0 = arith.constant 0 : i32
    %c0_i32_1 = arith.constant 0 : i32
    return %c0_i32, %c0_i32_0 : i32, i32
  }
  func.func @transform_2(%arg0: i32, %arg1: i32, %arg2: memref<1xi32, #tpu.memory_space<smem>>, %arg3: memref<1xi32, #tpu.memory_space<smem>>) -> (i32, i32) {
    %c0_i32 = arith.constant 0 : i32
    %c0_i32_0 = arith.constant 0 : i32
    return %arg0, %c0_i32 : i32, i32
  }
  func.func @transform_3(%arg0: i32, %arg1: i32, %arg2: memref<1xi32, #tpu.memory_space<smem>>, %arg3: memref<1xi32, #tpu.memory_space<smem>>) -> (i32, i32) {
    %c0_i32 = arith.constant 0 : i32
    %c0_i32_0 = arith.constant 0 : i32
    return %arg0, %c0_i32 : i32, i32
  }
  func.func @transform_4(%arg0: i32, %arg1: i32, %arg2: memref<1xi32, #tpu.memory_space<smem>>, %arg3: memref<1xi32, #tpu.memory_space<smem>>) -> (i32, i32) {
    %c0_i32 = arith.constant 0 : i32
    %c0_i32_0 = arith.constant 0 : i32
    %c0_i32_1 = arith.constant 0 : i32
    return %c0_i32, %c0_i32_0 : i32, i32
  }
  func.func @transform_5(%arg0: i32, %arg1: i32, %arg2: memref<1xi32, #tpu.memory_space<smem>>, %arg3: memref<1xi32, #tpu.memory_space<smem>>) -> (i32, i32) {
    %c0_i32 = arith.constant 0 : i32
    %c0_i32_0 = arith.constant 0 : i32
    %c0_i32_1 = arith.constant 0 : i32
    return %c0_i32, %c0_i32_0 : i32, i32
  }
  func.func @transform_6(%arg0: i32, %arg1: i32, %arg2: memref<1xi32, #tpu.memory_space<smem>>, %arg3: memref<1xi32, #tpu.memory_space<smem>>) -> (i32, i32) {
    %c0_i32 = arith.constant 0 : i32
    %c0_i32_0 = arith.constant 0 : i32
    return %arg0, %c0_i32 : i32, i32
  }
}

</mosaic_0001>

<bundles_post_ra>
// kernel: tpu_custom_call.1
= control target key start
LH: loop header
LB: loop body
LE: loop exit
PB: predicated region body
PF: predicated region fallthrough
CT: control target
= control target key end

     0   :  { %s2151_s0 = inlined_call_operand.<no memory space> [shape: s32[1], index: 0, kind: input, shape index: {}]   ;;  %s2152_s1 = inlined_call_operand.<no memory space> [shape: s32[1], index: 1, kind: input, shape index: {}]   ;;  %s2153_s2 = inlined_call_operand.hbm [shape: s8[160,384], index: 2, kind: input, shape index: {}]   ;;  %s2154_s3 = inlined_call_operand.hbm [shape: bf16[384,128], index: 3, kind: input, shape index: {}]   ;;  %s2155_s4 = inlined_call_operand.hbm [shape: bf16[160,128], index: 4, kind: input, shape index: {}]   ;;  %s2156_s5 = inlined_call_operand.vmem [shape: f32[160,1], index: 5, kind: input, shape index: {}]   ;;  %s2157_s6 = inlined_call_operand.vmem [shape: bf16[256,128], index: 6, kind: input, shape index: {}]   ;;  %s2158_s7 = inlined_call_operand.vmem [shape: f32[1,128], index: 7, kind: input, shape index: {}]   ;;  %s2159_s8 = inlined_call_operand.hbm [shape: bf16[160,128], index: 8, kind: output, shape index: {}]  }
   0x1   :  { %14 = sst [smem:[#allocation5]] %s2152_s1 }
   0x2   :  { %15 = vsyncpa [#allocation7], 0 }
   0x3   :  { %16 = vsyncpa [#allocation10], 0 }
   0x4   :  { %17 = vsyncpa [#allocation8], 0  ;;  %s1886_s29 = smov [#allocation9]   ;;  %s1944_s9 = sld [smem:[#allocation5]] }
   0x5   :  { %s40_s30 = sshll.u32 %s1886_s29, 4  ;;  %s41_s30 = int_to_ptr.vmem [resolvable:$true] %s40_s30 }
   0x6   :  { %s1806_s10 = scalar_lea.vmem %s41_s30, 3072  ;;  %p1811_p1 = scmp.lt.s32.totalorder %s41_s30, %s41_s30 }
   0x7   :  { %p1807_p0 = scmp.ne.s32.totalorder %s41_s30, %s1806_s10  ;;  %p1812_p2 = scmp.lt.s32.totalorder %s1806_s10, %s1806_s10 }
   0x9   :  { %p1813_p3 = por %p1812_p2, %p1811_p1 }
   0xb   :  { %p1814_p4 = pnand %p1813_p3, %p1807_p0 }
   0xd   :  { %1817 = shalt.err (!%p1814_p4)
}
   0xe   :  { %s1887_s11 = smov 64   ;;  %s1888_s12 = smov 4  }
   0xf   :  { %46 = dma.hbm_to_vmem [thread:$0]  %s2154_s3, 3072, %s41_s30, [#allocation10], %s1887_s11, %s1887_s11, %s1888_s12  }
  0x10   :  { %s1889_s14 = smov [#allocation6]   ;;  %s1890_s16 = smov [#allocation11]  }
  0x11   :  { %s28_s15 = sshll.u32 %s1889_s14, 4  ;;  %s52_s17 = sshll.u32 %s1890_s16, 4  ;;  %s1952_s15 = int_to_ptr.vmem [resolvable:$true] %s28_s15  ;;  %s53_s17 = int_to_ptr.vmem [resolvable:$true] %s52_s17 }
  0x12   :  { %s1395_s18 = smul.u32 384, %s1944_s9  ;;  %s1826_s19 = scalar_lea.vmem %s53_s17, 1280 }
  0x13   :  { %p1827_p5 = scmp.ne.s32.totalorder %s53_s17, %s1826_s19  ;;  %p1831_p6 = scmp.lt.s32.totalorder %s53_s17, %s53_s17 }
  0x14   :  { %p1832_p7 = scmp.lt.s32.totalorder %s1826_s19, %s1826_s19 }
  0x16   :  { %p1833_p8 = por %p1832_p7, %p1831_p6 }
  0x18   :  { %p1834_p9 = pnand %p1833_p8, %p1827_p5 }
  0x1a   :  { %1837 = shalt.err (!%p1834_p9)
}
  0x1b   :  { %58 = dma.hbm_to_vmem [thread:$0]  %s2155_s4, 1280, %s53_s17, [#allocation10], %s1887_s11, %s1887_s11, %s1888_s12  }
  0x1c   :  { %s27_s23 = scalar_lea.hbm %s2153_s2, %s1395_s18  ;;  %s1840_s27 = scalar_lea.hbm %s2153_s2, 1920 }
  0x1d   :  { %s1838_s24 = scalar_lea.hbm %s27_s23, 1920  ;;  %p1841_p11 = scmp.lt.s32.totalorder %s27_s23, %s2153_s2 }
  0x1e   :  { %p1839_p10 = scmp.ne.s32.totalorder %s27_s23, %s1838_s24  ;;  %p1842_p12 = scmp.lt.s32.totalorder %s1840_s27, %s1838_s24 }
  0x20   :  { %p1843_p13 = por %p1842_p12, %p1841_p11 }
  0x22   :  { %p1844_p0 = pnand %p1843_p13, %p1839_p10 }
  0x24   :  { %1847 = shalt.err (!%p1844_p0)
}
  0x25   :  { %s1848_s4 = scalar_lea.vmem %s1952_s15, 1920  ;;  %p1853_p2 = scmp.lt.s32.totalorder %s1952_s15, %s1952_s15 }
  0x26   :  { %p1849_p1 = scmp.ne.s32.totalorder %s1952_s15, %s1848_s4  ;;  %p1854_p3 = scmp.lt.s32.totalorder %s1848_s4, %s1848_s4 }
  0x28   :  { %p1855_p4 = por %p1854_p3, %p1853_p2 }
  0x2a   :  { %p1856_p5 = pnand %p1855_p4, %p1849_p1 }
  0x2c   :  { %1859 = shalt.err (!%p1856_p5)
}
  0x2d   :  { %s1891_s30 = smov 384   ;;  %s1892_s9 = smov 24  }
  0x2e   :  { %34 = dma.hbm_to_vmem [thread:$0]  %s27_s23, 1920, %s1952_s15, [#allocation7], %s1891_s30, %s1891_s30, %s1892_s9  }
  0x2f   :  { %1880 = dma.done.wait [#allocation7], 1920  }
  0x30   :  { %1881 = vsyncadd [#allocation7], 4294965376 }
  0x31   :  { %1882 = dma.done.wait [#allocation10], 4352  }
  0x32   :  { %1883 = vsyncadd [#allocation10], 4294962944  ;;  %v1893_v0 = vmov 0.0   ;;  %v1417_v1 = vld [vmem:[#allocation11] sm:$0xff]   ;;  %v1506_v2 = vld [vmem:[#allocation11 + $0x8] sm:$0xff]   ;;  %p1332_p6 = scmp.le.s32.totalorder %s2151_s0, 0 }
  0x33   :  { %82 = vst [vmem:[#allocation2 + $0x28] sm:$0xff] %v1893_v0  ;;  %83 = vst [vmem:[#allocation2 + $0x68] sm:$0xff] %v1893_v0  ;;  %v1507_v3 = vld [vmem:[#allocation11 + $0x10] sm:$0xff]   ;;  %v1418_v4 = vunpack.c.l.bf16 %v1417_v1  ;;  %v1419_v5 = vunpack.c.h.bf16 %v1417_v1  ;;  %v1422_v6 = vunpack.c.l.bf16 %v1506_v2  ;;  %v1423_v7 = vunpack.c.h.bf16 %v1506_v2  ;;  %v1508_v8 = vld [vmem:[#allocation11 + $0x18] sm:$0xff]   ;;  %s168_s1 = sld [smem:[#allocation5]] (!%p1332_p6) }
  0x34   :  { %84 = vst [vmem:[#allocation2 + $0x20] sm:$0xff] %v1893_v0  ;;  %85 = vst [vmem:[#allocation2 + $0x90] sm:$0xff] %v1893_v0  ;;  %v1509_v9 = vld [vmem:[#allocation11 + $0x20] sm:$0xff]   ;;  %v1510_v10 = vld [vmem:[#allocation11 + $0x28] sm:$0xff]   ;;  %v1426_v11 = vunpack.c.l.bf16 %v1507_v3  ;;  %v1427_v12 = vunpack.c.h.bf16 %v1507_v3  ;;  %v1430_v13 = vunpack.c.l.bf16 %v1508_v8  ;;  %v1431_v14 = vunpack.c.h.bf16 %v1508_v8 }
  0x35   :  { %86 = vst [vmem:[#allocation2 + $0x108] sm:$0xff] %v1893_v0  ;;  %87 = vst [vmem:[#allocation2 + $0x70] sm:$0xff] %v1893_v0  ;;  %v1511_v15 = vld [vmem:[#allocation11 + $0x30] sm:$0xff]   ;;  %v1512_v16 = vld [vmem:[#allocation11 + $0x38] sm:$0xff]   ;;  %v1434_v18 = vunpack.c.l.bf16 %v1509_v9  ;;  %v1435_v19 = vunpack.c.h.bf16 %v1509_v9  ;;  %v1438_v20 = vunpack.c.l.bf16 %v1510_v10  ;;  %v1439_v21 = vunpack.c.h.bf16 %v1510_v10 }
  0x36   :  { %88 = vst [vmem:[#allocation2 + $0xb8] sm:$0xff] %v1893_v0  ;;  %89 = vst [vmem:[#allocation2 + $0xc8] sm:$0xff] %v1893_v0  ;;  %v1513_v17 = vld [vmem:[#allocation11 + $0x40] sm:$0xff]   ;;  %v1514_v22 = vld [vmem:[#allocation11 + $0x48] sm:$0xff]   ;;  %v1442_v23 = vunpack.c.l.bf16 %v1511_v15  ;;  %v1443_v24 = vunpack.c.h.bf16 %v1511_v15  ;;  %v1446_v25 = vunpack.c.l.bf16 %v1512_v16  ;;  %v1447_v26 = vunpack.c.h.bf16 %v1512_v16 }
  0x37   :  { %90 = vst [vmem:[#allocation2 + $0x100] sm:$0xff] %v1893_v0  ;;  %91 = vst [vmem:[#allocation2 + $0xd8] sm:$0xff] %v1893_v0  ;;  %v1450_v27 = vunpack.c.l.bf16 %v1513_v17  ;;  %v1451_v28 = vunpack.c.h.bf16 %v1513_v17  ;;  %v1454_v29 = vunpack.c.l.bf16 %v1514_v22  ;;  %v1455_v30 = vunpack.c.h.bf16 %v1514_v22 }
  0x38   :  { %92 = vst [vmem:[#allocation2 + $0x138] sm:$0xff] %v1893_v0  ;;  %93 = vst [vmem:[#allocation2 + $0xa8] sm:$0xff] %v1893_v0 }
  0x39   :  { %94 = vst [vmem:[#allocation2 + $0x30] sm:$0xff] %v1893_v0  ;;  %95 = vst [vmem:[#allocation2 + $0x58] sm:$0xff] %v1893_v0  ;;  %s169_s13 = smul.u32 (!%p1332_p6), 384, %s168_s1 }
  0x3a   :  { %96 = vst [vmem:[#allocation2 + $0xe0] sm:$0xff] %v1893_v0  ;;  %97 = vst [vmem:[#allocation2 + $0x40] sm:$0xff] %v1893_v0 }
  0x3b   :  { %98 = vst [vmem:[#allocation2 + $0x118] sm:$0xff] %v1893_v0  ;;  %99 = vst [vmem:[#allocation2 + $0xe8] sm:$0xff] %v1893_v0  ;;  %s170_s14 = sshra.s32 (!%p1332_p6), %s169_s13, 3 }
  0x3c   :  { %100 = vst [vmem:[#allocation2 + $0x10] sm:$0xff] %v1893_v0  ;;  %101 = vst [vmem:[#allocation2 + $0x130] sm:$0xff] %v1893_v0  ;;  %s1333_s15 = sshll.u32 (!%p1332_p6), %s170_s14, 2 }
  0x3d   :  { %142 = vst [vmem:[#allocation2 + $0x18] sm:$0xff] %v1418_v4  ;;  %143 = vst [vmem:[#allocation2 + $0x120] sm:$0xff] %v1419_v5  ;;  %s1984_s16 = scalar_lea.vmem (!%p1332_p6), [#allocation9], %s1333_s15 }
  0x3e   :  { %144 = vst [vmem:[#allocation2 + $0x88] sm:$0xff] %v1422_v6  ;;  %145 = vst [vmem:[#allocation2 + $0x110] sm:$0xff] %v1423_v7 }
  0x3f   :  { %146 = vst [vmem:[#allocation2 + $0x48] sm:$0xff] %v1426_v11  ;;  %147 = vst [vmem:[#allocation2 + $0xf8] sm:$0xff] %v1427_v12 }
  0x40   :  { %148 = vst [vmem:[#allocation2 + $0x78] sm:$0xff] %v1430_v13  ;;  %149 = vst [vmem:[#allocation2 + $0x8] sm:$0xff] %v1431_v14 }
  0x41   :  { %150 = vst [vmem:[#allocation2 + $0xd0] sm:$0xff] %v1434_v18  ;;  %151 = vst [vmem:[#allocation2 + $0x128] sm:$0xff] %v1435_v19 }
  0x42   :  { %152 = vst [vmem:[#allocation2 + $0xa0] sm:$0xff] %v1438_v20  ;;  %153 = vst [vmem:[#allocation2 + $0x98] sm:$0xff] %v1439_v21  ;;  %166 = sbr.rel (%p1332_p6) target bundleno = 382 (0x17e), region = 45 }
  0x43   :  { %154 = vst [vmem:[#allocation2 + $0xb0] sm:$0xff] %v1442_v23  ;;  %155 = vst [vmem:[#allocation2 + $0xf0] sm:$0xff] %v1443_v24 }
  0x44   :  { %156 = vst [vmem:[#allocation2 + $0x60] sm:$0xff] %v1446_v25  ;;  %157 = vst [vmem:[#allocation2 + $0x80] sm:$0xff] %v1447_v26 }
  0x45   :  { %158 = vst [vmem:[#allocation2 + $0x50] sm:$0xff] %v1450_v27  ;;  %159 = vst [vmem:[#allocation2] sm:$0xff] %v1451_v28 }
  0x46   :  { %160 = vst [vmem:[#allocation2 + $0x38] sm:$0xff] %v1454_v29  ;;  %161 = vst [vmem:[#allocation2 + $0xc0] sm:$0xff] %v1455_v30 }
  0x47   :  { %v1978_v31 = vld [vmem:[#allocation6 + $0x8] sm:$0xff]  ;;  %v1980_v32 = vld [vmem:[#allocation6 + $0x10] sm:$0xff]  ;;  %v1756_v35 = vld [vmem:[%s1984_s16 + $0x78] sm:$0xff]  }
  0x48   :  { %v238_v33 = vunpack.c.l.s8.bf16 %v1978_v31  ;;  %v239_v34 = vunpack.c.l.s8.bf16 %v1980_v32  ;;  %v1757_v36 = vld [vmem:[%s1984_s16 + $0x38] sm:$0xff]   ;;  %1524 = vmatprep.subr.bf16.mxu0 %v1756_v35  ;;  %v1759_v38 = vld [vmem:[%s1984_s16 + $0x70] sm:$0xff]   ;;  %v1762_v41 = vld [vmem:[%s1984_s16 + $0x68] sm:$0xff]   ;;  %v241_v62 = vunpack.c.h.s8.bf16 %v1978_v31  ;;  %v242_v63 = vunpack.c.h.s8.bf16 %v1980_v32 }
  0x49   :  { %v1758_v37 = vld [vmem:[%s1984_s16 + $0xb8] sm:$0xff]   ;;  %1525 = vmatpush3.bf16.msra.mxu0 %v1757_v36  ;;  %v1760_v39 = vld [vmem:[%s1984_s16 + $0x30] sm:$0xff]   ;;  %v1763_v42 = vld [vmem:[%s1984_s16 + $0x28] sm:$0xff]  }
  0x4a   :  { %463 = vmatprep.mubr.bf16.mxu0 %v238_v33  ;;  %1710 = vmatprep.mubr.bf16.mxu1 %v239_v34  ;;  %v1761_v40 = vld [vmem:[%s1984_s16 + $0xb0] sm:$0xff]   ;;  %v1764_v43 = vld [vmem:[%s1984_s16 + $0xa8] sm:$0xff]   ;;  %v1765_v44 = vld [vmem:[%s1984_s16 + $0x60] sm:$0xff]  }
  0x4b   :  { %1694 = vmatprep.subr.bf16.mxu1 %v1758_v37  ;;  %1526 = vmatprep.subr.bf16.mxu0 %v1759_v38  ;;  %v1766_v45 = vld [vmem:[%s1984_s16 + $0x20] sm:$0xff]   ;;  %v1768_v47 = vld [vmem:[%s1984_s16 + $0x58] sm:$0xff]   ;;  %v1771_v50 = vld [vmem:[%s1984_s16 + $0x50] sm:$0xff]  }
  0x4c   :  { %1695 = vmatpush3.bf16.msra.mxu1 %v1758_v37  ;;  %v1767_v46 = vld [vmem:[%s1984_s16 + $0xa0] sm:$0xff]   ;;  %v1770_v48 = vld [vmem:[%s1984_s16 + $0x98] sm:$0xff]   ;;  %v1773_v51 = vld [vmem:[%s1984_s16 + $0x90] sm:$0xff]  }
  0x4d   :  { %1527 = vmatpush3.bf16.msra.mxu0 %v1760_v39  ;;  %1696 = vmatprep.subr.bf16.mxu1 %v1761_v40  ;;  %v1769_v49 = vld [vmem:[%s1984_s16 + $0x18] sm:$0xff]   ;;  %v1772_v52 = vld [vmem:[%s1984_s16 + $0x10] sm:$0xff]   ;;  %v1774_v53 = vld [vmem:[%s1984_s16 + $0x48] sm:$0xff]  }
  0x4e   :  { %1528 = vmatprep.subr.bf16.mxu0 %v1762_v41  ;;  %v1776_v54 = vld [vmem:[%s1984_s16 + $0x88] sm:$0xff]   ;;  %v1777_v56 = vld [vmem:[%s1984_s16 + $0x40] sm:$0xff]   ;;  %v225_v7 = vld [vmem:[#allocation6 + $0x18] sm:$0xff] }
  0x4f   :  { %v1775_v55 = vld [vmem:[%s1984_s16 + $0x8] sm:$0xff]   ;;  %v1779_v57 = vld [vmem:[%s1984_s16 + $0x80] sm:$0xff]   ;;  %v243_v8 = vunpack.c.l.s8.bf16 %v225_v7  ;;  %v233_v9 = vld [vmem:[#allocation6 + $0x58] sm:$0xff]  ;;  %v246_v14 = vunpack.c.h.s8.bf16 %v225_v7 }
  0x50   :  { %1697 = vmatpush3.bf16.msra.mxu1 %v1761_v40  ;;  %v1778_v58 = vld [vmem:[%s1984_s16] sm:$0xff]   ;;  %v227_v61 = vld [vmem:[#allocation6 + $0x28] sm:$0xff]  ;;  %v257_v12 = vunpack.c.l.s8.bf16 %v233_v9  ;;  %v229_v13 = vld [vmem:[#allocation6 + $0x38] sm:$0xff]  ;;  %v260_v17 = vunpack.c.h.s8.bf16 %v233_v9 }
  0x51   :  { %1698 = vmatprep.subr.bf16.mxu1 %v1764_v43  ;;  %1529 = vmatpush3.bf16.msra.mxu0 %v1763_v42  ;;  %v222_v59 = vld [vmem:[#allocation6] sm:$0xff]  ;;  %v245_v0 = vunpack.c.l.s8.bf16 %v227_v61  ;;  %v248_v5 = vunpack.c.h.s8.bf16 %v227_v61  ;;  %v236_v15 = vld [vmem:[#allocation6 + $0x70] sm:$0xff]  ;;  %v250_v16 = vunpack.c.l.s8.bf16 %v229_v13  ;;  %v253_v21 = vunpack.c.h.s8.bf16 %v229_v13  ;;  %v231_v26 = vld [vmem:[#allocation6 + $0x48] sm:$0xff] }
  0x52   :  { %1530 = vmatprep.subr.bf16.mxu0 %v1765_v44  ;;  %v237_v60 = vunpack.c.l.s8.bf16 %v222_v59  ;;  %v226_v1 = vld [vmem:[#allocation6 + $0x20] sm:$0xff]  ;;  %v240_v2 = vunpack.c.h.s8.bf16 %v222_v59  ;;  %v263_v18 = vunpack.c.l.s8.bf16 %v236_v15  ;;  %v228_v19 = vld [vmem:[#allocation6 + $0x30] sm:$0xff]  ;;  %v266_v22 = vunpack.c.h.s8.bf16 %v236_v15  ;;  %v235_v29 = vld [vmem:[#allocation6 + $0x68] sm:$0xff] }
  0x53   :  { %v230_v3 = vld [vmem:[#allocation6 + $0x40] sm:$0xff]  ;;  %v244_v4 = vunpack.c.l.s8.bf16 %v226_v1  ;;  %v247_v10 = vunpack.c.h.s8.bf16 %v226_v1  ;;  %v249_v20 = vunpack.c.l.s8.bf16 %v228_v19  ;;  %v232_v23 = vld [vmem:[#allocation6 + $0x50] sm:$0xff]  ;;  %v252_v24 = vunpack.c.h.s8.bf16 %v228_v19  ;;  %v267_v41 = vld [vmem:[#allocation2 + $0x28] sm:$0xff] }
  0x54   :  { %1699 = vmatpush3.bf16.msra.mxu1 %v1764_v43  ;;  %v251_v6 = vunpack.c.l.s8.bf16 %v230_v3  ;;  %v254_v11 = vunpack.c.h.s8.bf16 %v230_v3  ;;  %v256_v25 = vunpack.c.l.s8.bf16 %v232_v23  ;;  %v255_v27 = vunpack.c.l.s8.bf16 %v231_v26  ;;  %v234_v32 = vld [vmem:[#allocation6 + $0x60] sm:$0xff]  ;;  %v271_v7 = vld [vmem:[#allocation2 + $0x108] sm:$0xff] }
  0x55   :  { %1700 = vmatprep.subr.bf16.mxu1 %v1767_v46  ;;  %1531 = vmatpush3.bf16.msra.mxu0 %v1766_v45  ;;  %v259_v28 = vunpack.c.h.s8.bf16 %v232_v23  ;;  %v258_v30 = vunpack.c.h.s8.bf16 %v231_v26  ;;  %v262_v31 = vunpack.c.l.s8.bf16 %v235_v29  ;;  %v261_v33 = vunpack.c.l.s8.bf16 %v234_v32 }
  0x56   :  { %1532 = vmatprep.subr.bf16.mxu0 %v1768_v47  ;;  %v265_v34 = vunpack.c.h.s8.bf16 %v235_v29  ;;  %v264_v35 = vunpack.c.h.s8.bf16 %v234_v32 }
  0x58   :  { %1701 = vmatpush3.bf16.msra.mxu1 %v1767_v46 }
  0x59   :  { %1702 = vmatprep.subr.bf16.mxu1 %v1770_v48  ;;  %1533 = vmatpush3.bf16.msra.mxu0 %v1769_v49  ;;  %v268_v49 = vld [vmem:[#allocation2 + $0x68] sm:$0xff] }
  0x5a   :  { %1534 = vmatprep.subr.bf16.mxu0 %v1771_v50 }
  0x5c   :  { %1703 = vmatpush3.bf16.msra.mxu1 %v1770_v48 }
  0x5d   :  { %1704 = vmatprep.subr.bf16.mxu1 %v1773_v51  ;;  %1535 = vmatpush3.bf16.msra.mxu0 %v1772_v52 }
  0x5e   :  { %1536 = vmatprep.subr.bf16.mxu0 %v1774_v53 }
  0x60   :  { %1705 = vmatpush3.bf16.msra.mxu1 %v1773_v51 }
  0x61   :  { %1706 = vmatprep.subr.bf16.mxu1 %v1776_v54  ;;  %1537 = vmatpush3.bf16.msra.mxu0 %v1775_v55 }
  0x62   :  { %1538 = vmatprep.subr.bf16.mxu0 %v1777_v56  ;;  %v269_v56 = vld [vmem:[#allocation2 + $0x20] sm:$0xff] }
  0x64   :  { %1707 = vmatpush3.bf16.msra.mxu1 %v1776_v54 }
  0x65   :  { %1708 = vmatprep.subr.bf16.mxu1 %v1779_v57  ;;  %1539 = vmatpush3.bf16.msra.mxu0 %v1778_v58 }
  0x68   :  { %1709 = vmatpush3.bf16.msra.mxu1 %v1779_v57  ;;  %464 = vmatmul.mubr.bf16.vlgmr.msra.gmra.mxu0 %v237_v60 }
  0x69   :  { %471 = vmatprep.mubr.bf16.mxu0 %v241_v62 }
  0x6b   :  { %1711 = vmatmul.mubr.bf16.vlgmr.msra.gmra.mxu1 %v242_v63  ;;  %v270_v63 = vld [vmem:[#allocation2 + $0x90] sm:$0xff] }
  0x6c   :  { %1714 = vmatprep.mubr.bf16.mxu1 %v245_v0 }
  0x70   :  { %472 = vmatmul.mubr.bf16.gmra.mxu0 %v240_v2 }
  0x71   :  { %479 = vmatprep.mubr.bf16.mxu0 %v244_v4 }
  0x73   :  { %1715 = vmatmul.mubr.bf16.gmra.mxu1 %v248_v5 }
  0x74   :  { %1718 = vmatprep.mubr.bf16.mxu1 %v251_v6 }
  0x78   :  { %480 = vmatmul.mubr.bf16.gmra.mxu0 %v243_v8 }
  0x79   :  { %487 = vmatprep.mubr.bf16.mxu0 %v247_v10 }
  0x7b   :  { %1719 = vmatmul.mubr.bf16.gmra.mxu1 %v254_v11 }
  0x7c   :  { %1722 = vmatprep.mubr.bf16.mxu1 %v257_v12 }
  0x80   :  { %488 = vmatmul.mubr.bf16.gmra.mxu0 %v246_v14  ;;  %v272_v14 = vld [vmem:[#allocation2 + $0x70] sm:$0xff] }
  0x81   :  { %495 = vmatprep.mubr.bf16.mxu0 %v250_v16 }
  0x83   :  { %1723 = vmatmul.mubr.bf16.gmra.mxu1 %v260_v17 }
  0x84   :  { %1726 = vmatprep.mubr.bf16.mxu1 %v263_v18 }
  0x88   :  { %496 = vmatmul.mubr.bf16.gmra.mxu0 %v249_v20  ;;  %v273_v20 = vld [vmem:[#allocation2 + $0xb8] sm:$0xff] }
  0x89   :  { %503 = vmatprep.mubr.bf16.mxu0 %v253_v21 }
  0x8b   :  { %1727 = vmatmul.mubr.bf16.gmra.mxu1 %v266_v22 }
  0x90   :  { %504 = vmatmul.mubr.bf16.gmra.mxu0 %v252_v24 }
  0x91   :  { %511 = vmatprep.mubr.bf16.mxu0 %v256_v25 }
  0x98   :  { %512 = vmatmul.mubr.bf16.gmra.mxu0 %v255_v27  ;;  %v274_v27 = vld [vmem:[#allocation2 + $0xc8] sm:$0xff] }
  0x99   :  { %519 = vmatprep.mubr.bf16.mxu0 %v259_v28 }
  0xa0   :  { %520 = vmatmul.mubr.bf16.gmra.mxu0 %v258_v30 }
  0xa1   :  { %527 = vmatprep.mubr.bf16.mxu0 %v262_v31 }
  0xa8   :  { %528 = vmatmul.mubr.bf16.gmra.mxu0 %v261_v33 }
  0xa9   :  { %535 = vmatprep.mubr.bf16.mxu0 %v265_v34 }
  0xb0   :  { %536 = vmatmul.mubr.bf16.gmra.mxu0 %v264_v35  ;;  %v275_v35 = vld [vmem:[#allocation2 + $0x100] sm:$0xff] }
 0x128   :  { %v1540_v36 = vpop.f32.mrf.mxu0 }
 0x12a   :  { %v1541_v37 = vpop.f32.mrf.mxu0 }
 0x12b   :  { %v1712_v38 = vpop.f32.mrf.mxu1  ;;  %v1542_v39 = vadd.f32 %v1541_v37, %v1540_v36 }
 0x12c   :  { %v1543_v40 = vpop.f32.mrf.mxu0 }
 0x12d   :  { %v578_v42 = vpop.f32.mrf.mxu1 }
 0x12e   :  { %v579_v43 = vadd.f32 %v1542_v39, %v578_v42  ;;  %v1544_v44 = vpop.f32.mrf.mxu0  ;;  %v276_v42 = vld [vmem:[#allocation2 + $0xd8] sm:$0xff] }
 0x12f   :  { %v1713_v45 = vpop.f32.mrf.mxu1  ;;  %v1545_v47 = vadd.f32 %v1544_v44, %v1543_v40 }
 0x130   :  { %v657_v46 = vadd.f32 %v579_v43, %v267_v41  ;;  %v1546_v48 = vpop.f32.mrf.mxu0 }
 0x131   :  { %v581_v50 = vpop.f32.mrf.mxu1 }
 0x132   :  { %677 = vst [vmem:[#allocation2 + $0x28] sm:$0xff] %v657_v46  ;;  %v582_v51 = vadd.f32 %v1545_v47, %v581_v50  ;;  %v1547_v52 = vpop.f32.mrf.mxu0 }
 0x133   :  { %v1716_v53 = vpop.f32.mrf.mxu1  ;;  %v1548_v55 = vadd.f32 %v1547_v52, %v1546_v48  ;;  %v277_v48 = vld [vmem:[#allocation2 + $0x138] sm:$0xff] }
 0x134   :  { %v658_v54 = vadd.f32 %v582_v51, %v268_v49  ;;  %v1549_v57 = vpop.f32.mrf.mxu0 }
 0x135   :  { %v587_v58 = vadd.f32 %v1712_v38, %v1548_v55  ;;  %v594_v60 = vpop.f32.mrf.mxu1  ;;  %v278_v55 = vld [vmem:[#allocation2 + $0xa8] sm:$0xff] }
 0x136   :  { %678 = vst [vmem:[#allocation2 + $0x68] sm:$0xff] %v658_v54  ;;  %v1550_v59 = vpop.f32.mrf.mxu0 }
 0x137   :  { %v659_v61 = vadd.f32 %v587_v58, %v269_v56  ;;  %v1551_v62 = vadd.f32 %v1550_v59, %v1549_v57  ;;  %v1717_v3 = vpop.f32.mrf.mxu1 }
 0x138   :  { %v1552_v0 = vpop.f32.mrf.mxu0 }
 0x139   :  { %679 = vst [vmem:[#allocation2 + $0x20] sm:$0xff] %v659_v61  ;;  %v590_v1 = vadd.f32 %v1713_v45, %v1551_v62  ;;  %v597_v10 = vpop.f32.mrf.mxu1 }
 0x13a   :  { %v1553_v2 = vpop.f32.mrf.mxu0 }
 0x13b   :  { %v660_v4 = vadd.f32 %v590_v1, %v270_v63  ;;  %v1554_v5 = vadd.f32 %v1553_v2, %v1552_v0  ;;  %v1720_v17 = vpop.f32.mrf.mxu1  ;;  %v279_v63 = vld [vmem:[#allocation2 + $0x30] sm:$0xff] }
 0x13c   :  { %v1555_v6 = vpop.f32.mrf.mxu0 }
 0x13d   :  { %680 = vst [vmem:[#allocation2 + $0x90] sm:$0xff] %v660_v4  ;;  %v595_v8 = vadd.f32 %v1554_v5, %v594_v60  ;;  %v610_v24 = vpop.f32.mrf.mxu1 }
 0x13e   :  { %v1556_v9 = vpop.f32.mrf.mxu0 }
 0x13f   :  { %v661_v11 = vadd.f32 %v595_v8, %v271_v7  ;;  %v1557_v12 = vadd.f32 %v1556_v9, %v1555_v6  ;;  %v1721_v31 = vpop.f32.mrf.mxu1  ;;  %v280_v6 = vld [vmem:[#allocation2 + $0x58] sm:$0xff] }
 0x140   :  { %v1558_v13 = vpop.f32.mrf.mxu0 }
 0x141   :  { %681 = vst [vmem:[#allocation2 + $0x108] sm:$0xff] %v661_v11  ;;  %v598_v15 = vadd.f32 %v1557_v12, %v597_v10  ;;  %v613_v38 = vpop.f32.mrf.mxu1  ;;  %v281_v12 = vld [vmem:[#allocation2 + $0xe0] sm:$0xff] }
 0x142   :  { %v1559_v16 = vpop.f32.mrf.mxu0 }
 0x143   :  { %v662_v18 = vadd.f32 %v598_v15, %v272_v14  ;;  %v1560_v19 = vadd.f32 %v1559_v16, %v1558_v13  ;;  %v1724_v45 = vpop.f32.mrf.mxu1 }
 0x144   :  { %v1561_v21 = vpop.f32.mrf.mxu0 }
 0x145   :  { %682 = vst [vmem:[#allocation2 + $0x70] sm:$0xff] %v662_v18  ;;  %v603_v22 = vadd.f32 %v1716_v53, %v1560_v19  ;;  %v626_v52 = vpop.f32.mrf.mxu1  ;;  %v282_v19 = vld [vmem:[#allocation2 + $0x40] sm:$0xff] }
 0x146   :  { %v1562_v23 = vpop.f32.mrf.mxu0 }
 0x147   :  { %v663_v25 = vadd.f32 %v603_v22, %v273_v20  ;;  %v1563_v26 = vadd.f32 %v1562_v23, %v1561_v21  ;;  %v1725_v59 = vpop.f32.mrf.mxu1 }
 0x148   :  { %v1564_v28 = vpop.f32.mrf.mxu0 }
 0x149   :  { %683 = vst [vmem:[#allocation2 + $0xb8] sm:$0xff] %v663_v25  ;;  %v606_v29 = vadd.f32 %v1717_v3, %v1563_v26  ;;  %v629_v2 = vpop.f32.mrf.mxu1 }
 0x14a   :  { %v1565_v30 = vpop.f32.mrf.mxu0 }
 0x14b   :  { %v664_v32 = vadd.f32 %v606_v29, %v274_v27  ;;  %v1566_v33 = vadd.f32 %v1565_v30, %v1564_v28  ;;  %v1728_v9 = vpop.f32.mrf.mxu1  ;;  %v283_v27 = vld [vmem:[#allocation2 + $0x118] sm:$0xff] }
 0x14c   :  { %v1567_v34 = vpop.f32.mrf.mxu0 }
 0x14d   :  { %684 = vst [vmem:[#allocation2 + $0xc8] sm:$0xff] %v664_v32  ;;  %v611_v36 = vadd.f32 %v1566_v33, %v610_v24  ;;  %v642_v16 = vpop.f32.mrf.mxu1 }
 0x14e   :  { %v1568_v37 = vpop.f32.mrf.mxu0 }
 0x14f   :  { %v665_v39 = vadd.f32 %v611_v36, %v275_v35  ;;  %v1569_v40 = vadd.f32 %v1568_v37, %v1567_v34  ;;  %v1729_v23 = vpop.f32.mrf.mxu1  ;;  %v284_v34 = vld [vmem:[#allocation2 + $0xe8] sm:$0xff] }
 0x150   :  { %v1570_v41 = vpop.f32.mrf.mxu0 }
 0x151   :  { %685 = vst [vmem:[#allocation2 + $0x100] sm:$0xff] %v665_v39  ;;  %v614_v43 = vadd.f32 %v1569_v40, %v613_v38  ;;  %v645_v30 = vpop.f32.mrf.mxu1  ;;  %v285_v39 = vld [vmem:[#allocation2 + $0x10] sm:$0xff] }
 0x152   :  { %v1571_v44 = vpop.f32.mrf.mxu0 }
 0x153   :  { %v666_v46 = vadd.f32 %v614_v43, %v276_v42  ;;  %v1572_v47 = vadd.f32 %v1571_v44, %v1570_v41 }
 0x154   :  { %v1573_v49 = vpop.f32.mrf.mxu0 }
 0x155   :  { %686 = vst [vmem:[#allocation2 + $0xd8] sm:$0xff] %v666_v46  ;;  %v619_v50 = vadd.f32 %v1720_v17, %v1572_v47 }
 0x156   :  { %v1574_v51 = vpop.f32.mrf.mxu0 }
 0x157   :  { %v667_v53 = vadd.f32 %v619_v50, %v277_v48  ;;  %v1575_v54 = vadd.f32 %v1574_v51, %v1573_v49 }
 0x158   :  { %v1576_v56 = vpop.f32.mrf.mxu0 }
 0x159   :  { %687 = vst [vmem:[#allocation2 + $0x138] sm:$0xff] %v667_v53  ;;  %v622_v57 = vadd.f32 %v1721_v31, %v1575_v54 }
 0x15a   :  { %v1577_v58 = vpop.f32.mrf.mxu0 }
 0x15b   :  { %v668_v60 = vadd.f32 %v622_v57, %v278_v55  ;;  %v1578_v61 = vadd.f32 %v1577_v58, %v1576_v56 }
 0x15c   :  { %v1579_v62 = vpop.f32.mrf.mxu0 }
 0x15d   :  { %688 = vst [vmem:[#allocation2 + $0xa8] sm:$0xff] %v668_v60  ;;  %v627_v0 = vadd.f32 %v1578_v61, %v626_v52 }
 0x15e   :  { %v1580_v1 = vpop.f32.mrf.mxu0 }
 0x15f   :  { %v669_v3 = vadd.f32 %v627_v0, %v279_v63  ;;  %v1581_v4 = vadd.f32 %v1580_v1, %v1579_v62 }
 0x160   :  { %v1582_v5 = vpop.f32.mrf.mxu0 }
 0x161   :  { %689 = vst [vmem:[#allocation2 + $0x30] sm:$0xff] %v669_v3  ;;  %v630_v7 = vadd.f32 %v1581_v4, %v629_v2 }
 0x162   :  { %v1583_v8 = vpop.f32.mrf.mxu0 }
 0x163   :  { %v670_v10 = vadd.f32 %v630_v7, %v280_v6  ;;  %v1584_v11 = vadd.f32 %v1583_v8, %v1582_v5 }
 0x164   :  { %v1585_v13 = vpop.f32.mrf.mxu0 }
 0x165   :  { %690 = vst [vmem:[#allocation2 + $0x58] sm:$0xff] %v670_v10  ;;  %v635_v14 = vadd.f32 %v1724_v45, %v1584_v11  ;;  %v286_v45 = vld [vmem:[#allocation2 + $0x130] sm:$0xff] }
 0x166   :  { %v1586_v15 = vpop.f32.mrf.mxu0 }
 0x167   :  { %v671_v17 = vadd.f32 %v635_v14, %v281_v12  ;;  %v1587_v18 = vadd.f32 %v1586_v15, %v1585_v13 }
 0x168   :  { %v1588_v20 = vpop.f32.mrf.mxu0 }
 0x169   :  { %691 = vst [vmem:[#allocation2 + $0xe0] sm:$0xff] %v671_v17  ;;  %v638_v21 = vadd.f32 %v1725_v59, %v1587_v18 }
 0x16a   :  { %v1589_v22 = vpop.f32.mrf.mxu0 }
 0x16b   :  { %v672_v24 = vadd.f32 %v638_v21, %v282_v19  ;;  %v1590_v25 = vadd.f32 %v1589_v22, %v1588_v20 }
 0x16c   :  { %v1591_v26 = vpop.f32.mrf.mxu0 }
 0x16d   :  { %692 = vst [vmem:[#allocation2 + $0x40] sm:$0xff] %v672_v24  ;;  %v643_v28 = vadd.f32 %v1590_v25, %v642_v16 }
 0x16e   :  { %v1592_v29 = vpop.f32.mrf.mxu0 }
 0x16f   :  { %v673_v31 = vadd.f32 %v643_v28, %v283_v27  ;;  %v1593_v32 = vadd.f32 %v1592_v29, %v1591_v26 }
 0x170   :  { %v1594_v33 = vpop.f32.mrf.mxu0 }
 0x171   :  { %693 = vst [vmem:[#allocation2 + $0x118] sm:$0xff] %v673_v31  ;;  %v646_v35 = vadd.f32 %v1593_v32, %v645_v30 }
 0x172   :  { %v1595_v36 = vpop.f32.mrf.mxu0 }
 0x173   :  { %v674_v37 = vadd.f32 %v646_v35, %v284_v34  ;;  %v1596_v38 = vadd.f32 %v1595_v36, %v1594_v33 }
 0x174   :  { %v1597_v40 = vpop.f32.mrf.mxu0 }
 0x175   :  { %694 = vst [vmem:[#allocation2 + $0xe8] sm:$0xff] %v674_v37  ;;  %v651_v41 = vadd.f32 %v1728_v9, %v1596_v38 }
 0x176   :  { %v1598_v42 = vpop.f32.mrf.mxu0 }
 0x177   :  { %v675_v43 = vadd.f32 %v651_v41, %v285_v39  ;;  %v1599_v44 = vadd.f32 %v1598_v42, %v1597_v40 }
 0x179   :  { %695 = vst [vmem:[#allocation2 + $0x10] sm:$0xff] %v675_v43  ;;  %v654_v46 = vadd.f32 %v1729_v23, %v1599_v44 }
 0x17b   :  { %v676_v47 = vadd.f32 %v654_v46, %v286_v45 }
 0x17d   :  { %696 = vst [vmem:[#allocation2 + $0x130] sm:$0xff] %v676_v47 }
 0x17e PF:  { %v730_v48 = vld [vmem:[%s2156_s5 + $0x50] sm:$0xff]  ;;  %v720_v49 = vld [vmem:[%s2156_s5] sm:$0xff]  ;;  %v1894_v50 = vmov 0   ;;  %v731_v51 = vld [vmem:[%s2156_s5 + $0x58] sm:$0xff] }
 0x17f   :  { %1781 = vset.pattern.permute.xlu1 %v1894_v50  ;;  %1780 = vset.pattern.permute.xlu0 %v1894_v50  ;;  %v721_v52 = vld [vmem:[%s2156_s5 + $0x8] sm:$0xff]  ;;  %v723_v53 = vld [vmem:[%s2156_s5 + $0x18] sm:$0xff]  ;;  %v722_v54 = vld [vmem:[%s2156_s5 + $0x10] sm:$0xff] }
 0x180   :  { %792 = vperm.xlu1 %1781, %v730_v48   ;;  %742 = vperm.xlu0 %1780, %v720_v49   ;;  %v1782_v55 = vld [vmem:[%s2157_s6 + $0x78] sm:$0xff]   ;;  %v733_v57 = vld [vmem:[%s2156_s5 + $0x68] sm:$0xff]  ;;  %v1784_v58 = vld [vmem:[%s2157_s6 + $0x70] sm:$0xff]  }
 0x181   :  { %v1783_v56 = vld [vmem:[%s2157_s6 + $0x38] sm:$0xff]   ;;  %1618 = vmatprep.subr.bf16.mxu0 %v1782_v55  ;;  %1730 = vmatprep.subr.bf16.mxu1 %v1782_v55  ;;  %v732_v59 = vld [vmem:[%s2156_s5 + $0x60] sm:$0xff]  ;;  %v1785_v60 = vld [vmem:[%s2157_s6 + $0x30] sm:$0xff]  }
 0x182   :  { %1619 = vmatpush3.bf16.msra.mxu0 %v1783_v56  ;;  %1738 = vmatpush3.bf16.msra.mxu1 %v1783_v56  ;;  %v1786_v61 = vld [vmem:[%s2157_s6 + $0x68] sm:$0xff]   ;;  %v724_v63 = vld [vmem:[%s2156_s5 + $0x20] sm:$0xff]  ;;  %v735_v2 = vld [vmem:[%s2156_s5 + $0x78] sm:$0xff] }
 0x183   :  { %1620 = vmatprep.subr.bf16.mxu0 %v1784_v58  ;;  %1731 = vmatprep.subr.bf16.mxu1 %v1784_v58  ;;  %v725_v62 = vld [vmem:[%s2156_s5 + $0x28] sm:$0xff]  ;;  %v1788_v1 = vld [vmem:[%s2157_s6 + $0x60] sm:$0xff]   ;;  %v734_v3 = vld [vmem:[%s2156_s5 + $0x70] sm:$0xff] }
 0x184   :  { %797 = vperm.xlu1 %1781, %v731_v51   ;;  %747 = vperm.xlu0 %1780, %v721_v52   ;;  %v1787_v0 = vld [vmem:[%s2157_s6 + $0x28] sm:$0xff]   ;;  %v1789_v4 = vld [vmem:[%s2157_s6 + $0x20] sm:$0xff]   ;;  %v1790_v5 = vld [vmem:[%s2157_s6 + $0x58] sm:$0xff]  }
 0x185   :  { %v727_v6 = vld [vmem:[%s2156_s5 + $0x38] sm:$0xff]  ;;  %v726_v7 = vld [vmem:[%s2156_s5 + $0x30] sm:$0xff]  ;;  %v883_v11 = vld [vmem:[#allocation2 + $0x120] sm:$0xff] }
 0x186   :  { %1621 = vmatpush3.bf16.msra.mxu0 %v1785_v60  ;;  %1739 = vmatpush3.bf16.msra.mxu1 %v1785_v60  ;;  %v1791_v8 = vld [vmem:[%s2157_s6 + $0x18] sm:$0xff]   ;;  %v1792_v9 = vld [vmem:[%s2157_s6 + $0x50] sm:$0xff]   ;;  %v901_v13 = vld [vmem:[#allocation2 + $0xa0] sm:$0xff] }
 0x187   :  { %1622 = vmatprep.subr.bf16.mxu0 %v1786_v61  ;;  %1732 = vmatprep.subr.bf16.mxu1 %v1786_v61  ;;  %v881_v10 = vld [vmem:[#allocation2 + $0x18] sm:$0xff]  ;;  %v737_v15 = vld [vmem:[%s2156_s5 + $0x88] sm:$0xff]  ;;  %v736_v16 = vld [vmem:[%s2156_s5 + $0x80] sm:$0xff] }
 0x188   :  { %757 = vperm.xlu1 %1781, %v723_v53   ;;  %752 = vperm.xlu0 %1780, %v722_v54   ;;  %v921_v12 = vpack.c.bf16 %v883_v11, %v881_v10  ;;  %v903_v14 = vld [vmem:[#allocation2 + $0x98] sm:$0xff]  ;;  %v1793_v17 = vld [vmem:[%s2157_s6 + $0x10] sm:$0xff]   ;;  %v1794_v19 = vld [vmem:[%s2157_s6 + $0x48] sm:$0xff]  }
 0x189   :  { %v931_v18 = vpack.c.bf16 %v903_v14, %v901_v13  ;;  %v729_v20 = vld [vmem:[%s2156_s5 + $0x48] sm:$0xff]  ;;  %v728_v21 = vld [vmem:[%s2156_s5 + $0x40] sm:$0xff]  ;;  %v739_v24 = vld [vmem:[%s2156_s5 + $0x98] sm:$0xff] }
 0x18a   :  { %1623 = vmatpush3.bf16.msra.mxu0 %v1787_v0  ;;  %1740 = vmatpush3.bf16.msra.mxu1 %v1787_v0  ;;  %v1795_v22 = vld [vmem:[%s2157_s6 + $0x8] sm:$0xff]   ;;  %v1796_v23 = vld [vmem:[%s2157_s6 + $0x40] sm:$0xff]   ;;  %v738_v25 = vld [vmem:[%s2156_s5 + $0x90] sm:$0xff] }
 0x18b   :  { %1624 = vmatprep.subr.bf16.mxu0 %v1788_v1  ;;  %1733 = vmatprep.subr.bf16.mxu1 %v1788_v1  ;;  %v1797_v26 = vld [vmem:[%s2157_s6] sm:$0xff]   ;;  %v710_v27 = vld [vmem:[#allocation2 + $0x138] sm:$0xff]  ;;  %v700_v28 = vld [vmem:[#allocation2 + $0x28] sm:$0xff] }
 0x18c   :  { %807 = vperm.xlu1 %1781, %v733_v57   ;;  %802 = vperm.xlu0 %1780, %v732_v59   ;;  %v711_v33 = vld [vmem:[#allocation2 + $0xa8] sm:$0xff]  ;;  %v887_v36 = vld [vmem:[#allocation2 + $0x110] sm:$0xff]  ;;  %v702_v44 = vld [vmem:[#allocation2 + $0x20] sm:$0xff] }
 0x18d   :  { %1107 = vmatprep.mubr.bf16.mxu0 %v921_v12  ;;  %1147 = vmatprep.mubr.bf16.mxu1 %v931_v18  ;;  %v701_v34 = vld [vmem:[#allocation2 + $0x68] sm:$0xff]  ;;  %v905_v37 = vld [vmem:[#allocation2 + $0xb0] sm:$0xff]  ;;  %v713_v53 = vld [vmem:[#allocation2 + $0x58] sm:$0xff] }
 0x18e   :  { %1625 = vmatpush3.bf16.msra.mxu0 %v1789_v4  ;;  %1741 = vmatpush3.bf16.msra.mxu1 %v1789_v4  ;;  %v885_v35 = vld [vmem:[#allocation2 + $0x88] sm:$0xff]  ;;  %v907_v38 = vld [vmem:[#allocation2 + $0xf0] sm:$0xff]  ;;  %v891_v56 = vld [vmem:[#allocation2 + $0xf8] sm:$0xff] }
 0x18f   :  { %1626 = vmatprep.subr.bf16.mxu0 %v1790_v5  ;;  %1734 = vmatprep.subr.bf16.mxu1 %v1790_v5  ;;  %v703_v43 = vld [vmem:[#allocation2 + $0x90] sm:$0xff]  ;;  %v923_v45 = vpack.c.bf16 %v887_v36, %v885_v35  ;;  %v933_v46 = vpack.c.bf16 %v907_v38, %v905_v37  ;;  %v889_v55 = vld [vmem:[#allocation2 + $0x48] sm:$0xff]  ;;  %v909_v57 = vld [vmem:[#allocation2 + $0x60] sm:$0xff] }
 0x190   :  { %767 = vperm.xlu1 %1781, %v725_v62   ;;  %762 = vperm.xlu0 %1780, %v724_v63   ;;  %v712_v54 = vld [vmem:[#allocation2 + $0x30] sm:$0xff]  ;;  %v911_v58 = vld [vmem:[#allocation2 + $0x80] sm:$0xff]  ;;  %v704_v0 = vld [vmem:[#allocation2 + $0x108] sm:$0xff]  ;;  %v925_v1 = vpack.c.bf16 %v891_v56, %v889_v55 }
 0x191   :  { %v705_v63 = vld [vmem:[#allocation2 + $0x70] sm:$0xff]  ;;  %v714_v10 = vld [vmem:[#allocation2 + $0xe0] sm:$0xff]  ;;  %v893_v11 = vld [vmem:[#allocation2 + $0x78] sm:$0xff] }
 0x192   :  { %1627 = vmatpush3.bf16.msra.mxu0 %v1791_v8  ;;  %1742 = vmatpush3.bf16.msra.mxu1 %v1791_v8  ;;  %v895_v12 = vld [vmem:[#allocation2 + $0x8] sm:$0xff]  ;;  %v913_v13 = vld [vmem:[#allocation2 + $0x50] sm:$0xff]  ;;  %v915_v14 = vld [vmem:[#allocation2] sm:$0xff] }
 0x193   :  { %1628 = vmatprep.subr.bf16.mxu0 %v1792_v9  ;;  %1735 = vmatprep.subr.bf16.mxu1 %v1792_v9  ;;  %v715_v9 = vld [vmem:[#allocation2 + $0x40] sm:$0xff] }
 0x194   :  { %817 = vperm.xlu1 %1781, %v735_v2   ;;  %812 = vperm.xlu0 %1780, %v734_v3   ;;  %v935_v2 = vpack.c.bf16 %v911_v58, %v909_v57 }
 0x196   :  { %1629 = vmatpush3.bf16.msra.mxu0 %v1793_v17  ;;  %1743 = vmatpush3.bf16.msra.mxu1 %v1793_v17 }
 0x197   :  { %1630 = vmatprep.subr.bf16.mxu0 %v1794_v19  ;;  %1736 = vmatprep.subr.bf16.mxu1 %v1794_v19  ;;  %v707_v19 = vld [vmem:[#allocation2 + $0xc8] sm:$0xff] }
 0x198   :  { %777 = vperm.xlu1 %1781, %v727_v6   ;;  %772 = vperm.xlu0 %1780, %v726_v7  }
 0x19a   :  { %1631 = vmatpush3.bf16.msra.mxu0 %v1795_v22  ;;  %1744 = vmatpush3.bf16.msra.mxu1 %v1795_v22  ;;  %v937_v22 = vpack.c.bf16 %v915_v14, %v913_v13 }
 0x19b   :  { %1632 = vmatprep.subr.bf16.mxu0 %v1796_v23  ;;  %1737 = vmatprep.subr.bf16.mxu1 %v1796_v23 }
 0x19c   :  { %827 = vperm.xlu1 %1781, %v737_v15   ;;  %822 = vperm.xlu0 %1780, %v736_v16  }
 0x19e   :  { %1633 = vmatpush3.bf16.msra.mxu0 %v1797_v26  ;;  %1745 = vmatpush3.bf16.msra.mxu1 %v1797_v26 }
 0x1a0   :  { %787 = vperm.xlu1 %1781, %v729_v20   ;;  %782 = vperm.xlu0 %1780, %v728_v21   ;;  %v706_v20 = vld [vmem:[#allocation2 + $0xb8] sm:$0xff]  ;;  %v927_v21 = vpack.c.bf16 %v895_v12, %v893_v11 }
 0x1a4   :  { %837 = vperm.xlu1 %1781, %v739_v24   ;;  %832 = vperm.xlu0 %1780, %v738_v25  }
 0x1fb   :  { %v793_v29 = vpop.permute.xlu1 %792  ;;  %v743_v30 = vpop.permute.xlu0 %742 }
 0x1fc   :  { %v850_v31 = vmul.f32 %v793_v29, %v710_v27  ;;  %v840_v32 = vmul.f32 %v743_v30, %v700_v28  ;;  %v717_v29 = vld [vmem:[#allocation2 + $0xe8] sm:$0xff]  ;;  %v716_v30 = vld [vmem:[#allocation2 + $0x118] sm:$0xff] }
 0x1fe   :  { %870 = vst [vmem:[#allocation2 + $0x138] sm:$0xff] %v850_v31  ;;  %860 = vst [vmem:[#allocation2 + $0x28] sm:$0xff] %v840_v32 }
 0x1ff   :  { %v798_v39 = vpop.permute.xlu1 %797  ;;  %v748_v40 = vpop.permute.xlu0 %747 }
 0x200   :  { %v851_v41 = vmul.f32 %v798_v39, %v711_v33  ;;  %v841_v42 = vmul.f32 %v748_v40, %v701_v34  ;;  %v917_v33 = vld [vmem:[#allocation2 + $0x38] sm:$0xff]  ;;  %v919_v34 = vld [vmem:[#allocation2 + $0xc0] sm:$0xff] }
 0x201   :  { %v709_v39 = vld [vmem:[#allocation2 + $0xd8] sm:$0xff]  ;;  %v708_v40 = vld [vmem:[#allocation2 + $0x100] sm:$0xff] }
 0x202   :  { %871 = vst [vmem:[#allocation2 + $0xa8] sm:$0xff] %v851_v41  ;;  %861 = vst [vmem:[#allocation2 + $0x68] sm:$0xff] %v841_v42  ;;  %v920_v47 = vpack.c.bf16 %v841_v42, %v840_v32  ;;  %v930_v48 = vpack.c.bf16 %v851_v41, %v850_v31  ;;  %v897_v31 = vld [vmem:[#allocation2 + $0xd0] sm:$0xff]  ;;  %v899_v32 = vld [vmem:[#allocation2 + $0x128] sm:$0xff]  ;;  %v939_v42 = vpack.c.bf16 %v919_v34, %v917_v33 }
 0x203   :  { %v758_v49 = vpop.permute.xlu1 %757  ;;  %v753_v50 = vpop.permute.xlu0 %752  ;;  %v929_v41 = vpack.c.bf16 %v899_v32, %v897_v31 }
 0x204   :  { %v843_v51 = vmul.f32 %v758_v49, %v703_v43  ;;  %v842_v52 = vmul.f32 %v753_v50, %v702_v44  ;;  %1108 = vmatmul.mubr.bf16.vlgmr.msra.gmra.mxu0 %v920_v47  ;;  %1148 = vmatmul.mubr.bf16.vlgmr.msra.gmra.mxu1 %v930_v48  ;;  %v719_v49 = vld [vmem:[#allocation2 + $0x130] sm:$0xff] }
 0x205   :  { %1115 = vmatprep.mubr.bf16.mxu0 %v923_v45  ;;  %1155 = vmatprep.mubr.bf16.mxu1 %v933_v46  ;;  %v718_v50 = vld [vmem:[#allocation2 + $0x10] sm:$0xff] }
 0x206   :  { %863 = vst [vmem:[#allocation2 + $0x90] sm:$0xff] %v843_v51  ;;  %862 = vst [vmem:[#allocation2 + $0x20] sm:$0xff] %v842_v52  ;;  %v922_v3 = vpack.c.bf16 %v843_v51, %v842_v52 }
 0x207   :  { %v808_v59 = vpop.permute.xlu1 %807  ;;  %v803_v60 = vpop.permute.xlu0 %802 }
 0x208   :  { %v853_v61 = vmul.f32 %v808_v59, %v713_v53  ;;  %v852_v62 = vmul.f32 %v803_v60, %v712_v54 }
 0x20a   :  { %873 = vst [vmem:[#allocation2 + $0x58] sm:$0xff] %v853_v61  ;;  %872 = vst [vmem:[#allocation2 + $0x30] sm:$0xff] %v852_v62  ;;  %v932_v4 = vpack.c.bf16 %v853_v61, %v852_v62  ;;  %v2123_v61 = vld [vmem:[%s2158_s7] ss:$0 sm:$0xff]  ;;  %s1895_s7 = smov [#allocation12]  }
 0x20b   :  { %v768_v5 = vpop.permute.xlu1 %767  ;;  %v763_v6 = vpop.permute.xlu0 %762  ;;  %s1313_s14 = sshll.u32 %s1895_s7, 4  ;;  %s1314_s14 = int_to_ptr.vmem [resolvable:$true] %s1313_s14 }
 0x20c   :  { %v845_v7 = vmul.f32 %v768_v5, %v705_v63  ;;  %v844_v8 = vmul.f32 %v763_v6, %v704_v0  ;;  %1116 = vmatmul.mubr.bf16.gmra.mxu0 %v922_v3  ;;  %1156 = vmatmul.mubr.bf16.gmra.mxu1 %v932_v4  ;;  %s1860_s15 = scalar_lea.vmem %s1314_s14, 1280  ;;  %p1865_p8 = scmp.lt.s32.totalorder %s1314_s14, %s1314_s14 }
 0x20d   :  { %1123 = vmatprep.mubr.bf16.mxu0 %v925_v1  ;;  %1163 = vmatprep.mubr.bf16.mxu1 %v935_v2  ;;  %p1861_p7 = scmp.ne.s32.totalorder %s1314_s14, %s1860_s15  ;;  %p1866_p9 = scmp.lt.s32.totalorder %s1860_s15, %s1860_s15 }
 0x20e   :  { %865 = vst [vmem:[#allocation2 + $0x70] sm:$0xff] %v845_v7  ;;  %864 = vst [vmem:[#allocation2 + $0x108] sm:$0xff] %v844_v8  ;;  %v924_v23 = vpack.c.bf16 %v845_v7, %v844_v8 }
 0x20f   :  { %v818_v15 = vpop.permute.xlu1 %817  ;;  %v813_v16 = vpop.permute.xlu0 %812  ;;  %p1867_p10 = por %p1866_p9, %p1865_p8 }
 0x210   :  { %v855_v17 = vmul.f32 %v818_v15, %v715_v9  ;;  %v854_v18 = vmul.f32 %v813_v16, %v714_v10 }
 0x211   :  { %p1868_p11 = pnand %p1867_p10, %p1861_p7 }
 0x212   :  { %875 = vst [vmem:[#allocation2 + $0x40] sm:$0xff] %v855_v17  ;;  %874 = vst [vmem:[#allocation2 + $0xe0] sm:$0xff] %v854_v18  ;;  %v934_v24 = vpack.c.bf16 %v855_v17, %v854_v18 }
 0x213   :  { %v778_v25 = vpop.permute.xlu1 %777  ;;  %v773_v26 = vpop.permute.xlu0 %772 }
 0x214   :  { %v847_v27 = vmul.f32 %v778_v25, %v707_v19  ;;  %v846_v28 = vmul.f32 %v773_v26, %v706_v20  ;;  %1124 = vmatmul.mubr.bf16.gmra.mxu0 %v924_v23  ;;  %1164 = vmatmul.mubr.bf16.gmra.mxu1 %v934_v24 }
 0x215   :  { %1131 = vmatprep.mubr.bf16.mxu0 %v927_v21  ;;  %1171 = vmatprep.mubr.bf16.mxu1 %v937_v22 }
 0x216   :  { %867 = vst [vmem:[#allocation2 + $0xc8] sm:$0xff] %v847_v27  ;;  %866 = vst [vmem:[#allocation2 + $0xb8] sm:$0xff] %v846_v28  ;;  %v926_v43 = vpack.c.bf16 %v847_v27, %v846_v28 }
 0x217   :  { %v828_v35 = vpop.permute.xlu1 %827  ;;  %v823_v36 = vpop.permute.xlu0 %822 }
 0x218   :  { %v857_v37 = vmul.f32 %v828_v35, %v717_v29  ;;  %v856_v38 = vmul.f32 %v823_v36, %v716_v30 }
 0x21a   :  { %877 = vst [vmem:[#allocation2 + $0xe8] sm:$0xff] %v857_v37  ;;  %876 = vst [vmem:[#allocation2 + $0x118] sm:$0xff] %v856_v38  ;;  %v936_v44 = vpack.c.bf16 %v857_v37, %v856_v38 }
 0x21b   :  { %v788_v45 = vpop.permute.xlu1 %787  ;;  %v783_v46 = vpop.permute.xlu0 %782 }
 0x21c   :  { %v849_v47 = vmul.f32 %v788_v45, %v709_v39  ;;  %v848_v48 = vmul.f32 %v783_v46, %v708_v40  ;;  %1132 = vmatmul.mubr.bf16.gmra.mxu0 %v926_v43  ;;  %1172 = vmatmul.mubr.bf16.gmra.mxu1 %v936_v44 }
 0x21d   :  { %1139 = vmatprep.mubr.bf16.mxu0 %v929_v41  ;;  %1179 = vmatprep.mubr.bf16.mxu1 %v939_v42 }
 0x21e   :  { %869 = vst [vmem:[#allocation2 + $0xd8] sm:$0xff] %v849_v47  ;;  %868 = vst [vmem:[#allocation2 + $0x100] sm:$0xff] %v848_v48  ;;  %v928_v55 = vpack.c.bf16 %v849_v47, %v848_v48 }
 0x21f   :  { %v838_v51 = vpop.permute.xlu1 %837  ;;  %v833_v52 = vpop.permute.xlu0 %832 }
 0x220   :  { %v859_v53 = vmul.f32 %v838_v51, %v719_v49  ;;  %v858_v54 = vmul.f32 %v833_v52, %v718_v50 }
 0x222   :  { %879 = vst [vmem:[#allocation2 + $0x130] sm:$0xff] %v859_v53  ;;  %878 = vst [vmem:[#allocation2 + $0x10] sm:$0xff] %v858_v54  ;;  %v938_v56 = vpack.c.bf16 %v859_v53, %v858_v54 }
 0x224   :  { %1140 = vmatmul.mubr.bf16.gmra.mxu0 %v928_v55  ;;  %1180 = vmatmul.mubr.bf16.gmra.mxu1 %v938_v56 }
 0x2c4   :  { %v1634_v57 = vpop.f32.mrf.mxu0  ;;  %v1664_v58 = vpop.f32.mrf.mxu1 }
 0x2c6   :  { %v1635_v59 = vpop.f32.mrf.mxu0  ;;  %v1665_v60 = vpop.f32.mrf.mxu1 }
 0x2c7   :  { %v1636_v62 = vadd.f32 %v1635_v59, %v1634_v57  ;;  %v1666_v63 = vadd.f32 %v1665_v60, %v1664_v58 }
 0x2c8   :  { %v1637_v0 = vpop.f32.mrf.mxu0  ;;  %v1667_v1 = vpop.f32.mrf.mxu1 }
 0x2c9   :  { %v1110_v2 = vadd.f32 %v1636_v62, %v2123_v61  ;;  %v1150_v3 = vadd.f32 %v1666_v63, %v2123_v61 }
 0x2ca   :  { %v1638_v4 = vpop.f32.mrf.mxu0  ;;  %v1668_v5 = vpop.f32.mrf.mxu1 }
 0x2cb   :  { %v1639_v6 = vadd.f32 %v1638_v4, %v1637_v0  ;;  %v1669_v7 = vadd.f32 %v1668_v5, %v1667_v1  ;;  %v1188_v12 = vmax.f32 %v1110_v2, 0.0  ;;  %v1198_v13 = vmax.f32 %v1150_v3, 0.0 }
 0x2cc   :  { %v1640_v8 = vpop.f32.mrf.mxu0  ;;  %v1670_v9 = vpop.f32.mrf.mxu1 }
 0x2cd   :  { %v1113_v10 = vadd.f32 %v1639_v6, %v2123_v61  ;;  %v1153_v11 = vadd.f32 %v1669_v7, %v2123_v61 }
 0x2ce   :  { %v1641_v14 = vpop.f32.mrf.mxu0  ;;  %v1671_v15 = vpop.f32.mrf.mxu1 }
 0x2cf   :  { %v1189_v16 = vmax.f32 %v1113_v10, 0.0  ;;  %v1199_v17 = vmax.f32 %v1153_v11, 0.0  ;;  %v1642_v18 = vadd.f32 %v1641_v14, %v1640_v8  ;;  %v1672_v19 = vadd.f32 %v1671_v15, %v1670_v9 }
 0x2d0   :  { %v1643_v20 = vpop.f32.mrf.mxu0  ;;  %v1673_v21 = vpop.f32.mrf.mxu1 }
 0x2d1   :  { %v1459_v22 = vpack.c.bf16 %v1189_v16, %v1188_v12  ;;  %v1484_v23 = vpack.c.bf16 %v1199_v17, %v1198_v13  ;;  %v1118_v24 = vadd.f32 %v1642_v18, %v2123_v61  ;;  %v1158_v25 = vadd.f32 %v1672_v19, %v2123_v61 }
 0x2d2   :  { %v1644_v26 = vpop.f32.mrf.mxu0  ;;  %v1674_v27 = vpop.f32.mrf.mxu1 }
 0x2d3   :  { %1460 = vst [vmem:[#allocation12] sm:$0xff] %v1459_v22   ;;  %1519 = vst [vmem:[#allocation12 + $0x28] sm:$0xff] %v1484_v23   ;;  %v1645_v28 = vadd.f32 %v1644_v26, %v1643_v20  ;;  %v1675_v29 = vadd.f32 %v1674_v27, %v1673_v21  ;;  %v1190_v34 = vmax.f32 %v1118_v24, 0.0  ;;  %v1200_v35 = vmax.f32 %v1158_v25, 0.0 }
 0x2d4   :  { %v1646_v30 = vpop.f32.mrf.mxu0  ;;  %v1676_v31 = vpop.f32.mrf.mxu1 }
 0x2d5   :  { %v1121_v32 = vadd.f32 %v1645_v28, %v2123_v61  ;;  %v1161_v33 = vadd.f32 %v1675_v29, %v2123_v61 }
 0x2d6   :  { %v1647_v36 = vpop.f32.mrf.mxu0  ;;  %v1677_v37 = vpop.f32.mrf.mxu1 }
 0x2d7   :  { %v1191_v38 = vmax.f32 %v1121_v32, 0.0  ;;  %v1201_v39 = vmax.f32 %v1161_v33, 0.0  ;;  %v1648_v40 = vadd.f32 %v1647_v36, %v1646_v30  ;;  %v1678_v41 = vadd.f32 %v1677_v37, %v1676_v31 }
 0x2d8   :  { %v1649_v42 = vpop.f32.mrf.mxu0  ;;  %v1679_v43 = vpop.f32.mrf.mxu1 }
 0x2d9   :  { %v1464_v44 = vpack.c.bf16 %v1191_v38, %v1190_v34  ;;  %v1489_v45 = vpack.c.bf16 %v1201_v39, %v1200_v35  ;;  %v1126_v46 = vadd.f32 %v1648_v40, %v2123_v61  ;;  %v1166_v47 = vadd.f32 %v1678_v41, %v2123_v61 }
 0x2da   :  { %v1650_v48 = vpop.f32.mrf.mxu0  ;;  %v1680_v49 = vpop.f32.mrf.mxu1 }
 0x2db   :  { %1515 = vst [vmem:[#allocation12 + $0x8] sm:$0xff] %v1464_v44   ;;  %1520 = vst [vmem:[#allocation12 + $0x30] sm:$0xff] %v1489_v45   ;;  %v1651_v50 = vadd.f32 %v1650_v48, %v1649_v42  ;;  %v1681_v51 = vadd.f32 %v1680_v49, %v1679_v43  ;;  %v1192_v56 = vmax.f32 %v1126_v46, 0.0  ;;  %v1202_v57 = vmax.f32 %v1166_v47, 0.0 }
 0x2dc   :  { %v1652_v52 = vpop.f32.mrf.mxu0  ;;  %v1682_v53 = vpop.f32.mrf.mxu1 }
 0x2dd   :  { %v1129_v54 = vadd.f32 %v1651_v50, %v2123_v61  ;;  %v1169_v55 = vadd.f32 %v1681_v51, %v2123_v61 }
 0x2de   :  { %v1653_v58 = vpop.f32.mrf.mxu0  ;;  %v1683_v59 = vpop.f32.mrf.mxu1 }
 0x2df   :  { %v1193_v60 = vmax.f32 %v1129_v54, 0.0  ;;  %v1203_v62 = vmax.f32 %v1169_v55, 0.0  ;;  %v1654_v63 = vadd.f32 %v1653_v58, %v1652_v52  ;;  %v1684_v0 = vadd.f32 %v1683_v59, %v1682_v53 }
 0x2e0   :  { %v1655_v1 = vpop.f32.mrf.mxu0  ;;  %v1685_v2 = vpop.f32.mrf.mxu1 }
 0x2e1   :  { %v1469_v3 = vpack.c.bf16 %v1193_v60, %v1192_v56  ;;  %v1494_v4 = vpack.c.bf16 %v1203_v62, %v1202_v57  ;;  %v1134_v5 = vadd.f32 %v1654_v63, %v2123_v61  ;;  %v1174_v6 = vadd.f32 %v1684_v0, %v2123_v61 }
 0x2e2   :  { %v1656_v7 = vpop.f32.mrf.mxu0  ;;  %v1686_v8 = vpop.f32.mrf.mxu1 }
 0x2e3   :  { %1516 = vst [vmem:[#allocation12 + $0x10] sm:$0xff] %v1469_v3   ;;  %1521 = vst [vmem:[#allocation12 + $0x38] sm:$0xff] %v1494_v4   ;;  %v1657_v9 = vadd.f32 %v1656_v7, %v1655_v1  ;;  %v1687_v10 = vadd.f32 %v1686_v8, %v1685_v2  ;;  %v1194_v15 = vmax.f32 %v1134_v5, 0.0  ;;  %v1204_v16 = vmax.f32 %v1174_v6, 0.0 }
 0x2e4   :  { %v1658_v11 = vpop.f32.mrf.mxu0  ;;  %v1688_v12 = vpop.f32.mrf.mxu1 }
 0x2e5   :  { %v1137_v13 = vadd.f32 %v1657_v9, %v2123_v61  ;;  %v1177_v14 = vadd.f32 %v1687_v10, %v2123_v61 }
 0x2e6   :  { %v1659_v17 = vpop.f32.mrf.mxu0  ;;  %v1689_v18 = vpop.f32.mrf.mxu1 }
 0x2e7   :  { %v1195_v19 = vmax.f32 %v1137_v13, 0.0  ;;  %v1205_v20 = vmax.f32 %v1177_v14, 0.0  ;;  %v1660_v21 = vadd.f32 %v1659_v17, %v1658_v11  ;;  %v1690_v22 = vadd.f32 %v1689_v18, %v1688_v12 }
 0x2e8   :  { %v1661_v23 = vpop.f32.mrf.mxu0  ;;  %v1691_v24 = vpop.f32.mrf.mxu1 }
 0x2e9   :  { %v1474_v25 = vpack.c.bf16 %v1195_v19, %v1194_v15  ;;  %v1499_v26 = vpack.c.bf16 %v1205_v20, %v1204_v16  ;;  %v1142_v29 = vadd.f32 %v1660_v21, %v2123_v61  ;;  %v1182_v30 = vadd.f32 %v1690_v22, %v2123_v61 }
 0x2ea   :  { %v1662_v27 = vpop.f32.mrf.mxu0  ;;  %v1692_v28 = vpop.f32.mrf.mxu1 }
 0x2eb   :  { %1517 = vst [vmem:[#allocation12 + $0x18] sm:$0xff] %v1474_v25   ;;  %1522 = vst [vmem:[#allocation12 + $0x40] sm:$0xff] %v1499_v26   ;;  %v1663_v31 = vadd.f32 %v1662_v27, %v1661_v23  ;;  %v1693_v32 = vadd.f32 %v1692_v28, %v1691_v24  ;;  %v1196_v35 = vmax.f32 %v1142_v29, 0.0  ;;  %v1206_v36 = vmax.f32 %v1182_v30, 0.0 }
 0x2ed   :  { %v1145_v33 = vadd.f32 %v1663_v31, %v2123_v61  ;;  %v1185_v34 = vadd.f32 %v1693_v32, %v2123_v61 }
 0x2ef   :  { %v1197_v37 = vmax.f32 %v1145_v33, 0.0  ;;  %v1207_v38 = vmax.f32 %v1185_v34, 0.0 }
 0x2f1   :  { %v1479_v39 = vpack.c.bf16 %v1197_v37, %v1196_v35  ;;  %v1504_v40 = vpack.c.bf16 %v1207_v38, %v1206_v36 }
 0x2f3   :  { %1518 = vst [vmem:[#allocation12 + $0x20] sm:$0xff] %v1479_v39   ;;  %1523 = vst [vmem:[#allocation12 + $0x48] sm:$0xff] %v1504_v40  }
 0x2f4   :  { %1871 = shalt.err (!%p1868_p11)
}
 0x2f5   :  { %1319 = dma.vmem_to_hbm [thread:$0]  %s1314_s14, 1280, %s2159_s8, [#allocation8], %s1887_s11, %s1887_s11, %s1888_s12  }
 0x2f6   :  { %1884 = dma.done.wait [#allocation8], 1280  }
 0x2f7   :  { %1885 = vsyncadd [#allocation8], 4294966016 }
 0x2f8   :  { %1323 = vsyncpa [#allocation7], 1 }
 0x2f9   :  { %1324 = vsyncpa [#allocation10], 1 }
 0x2fa   :  { %1325 = vsyncpa [#allocation8], 1 }

</bundles_post_ra>
